<compile_context>
chip_gen: v5e
topology: v5e:2x2
jax: 0.10.0
libtpu: 0.0.40
codegen_flags: <defaults>
</compile_context>

<pallas_src>
import functools

import jax
import jax.numpy as jnp
from jax.experimental import pallas as pl
from jax.experimental.pallas import tpu as pltpu


def _round_up(n, m):
    return ((n + m - 1) // m) * m


def _mlp_kernel(x_ref, w1_ref, b1_ref, w2_ref, b2_ref, w3_ref, b3_ref, o_ref):
    # Layer 1: Linear(F -> H1p) + (Dropout = identity) + ReLU
    x = x_ref[...].astype(jnp.bfloat16)
    h1 = jnp.dot(x, w1_ref[...], preferred_element_type=jnp.float32)
    h1 = jnp.maximum(h1 + b1_ref[...], 0.0)

    # Layer 2: Linear(H1p -> H2p) + (Dropout = identity) + ReLU
    h2 = jnp.dot(h1.astype(jnp.bfloat16), w2_ref[...],
                 preferred_element_type=jnp.float32)
    h2 = jnp.maximum(h2 + b2_ref[...], 0.0)

    # Layer 3: Linear(H2p -> O)
    out = jnp.dot(h2.astype(jnp.bfloat16), w3_ref[...],
                  preferred_element_type=jnp.float32)
    o_ref[...] = (out + b3_ref[...]).astype(o_ref.dtype)


def light_mlp1_forward(x, padded_params):
    """Fused MLP forward.  x: (B, F) float32; params already padded + bf16."""
    w1, b1, w2, b2, w3, b3 = padded_params
    B, F = x.shape
    H1P = w1.shape[1]
    H2P = w2.shape[1]
    O = w3.shape[1]

    # Batch tile: multiple of 8 sublanes, <= 256 rows (fills v6e/v7x MXU in one
    # pass, 2x passes on v5e's 4x128x128 MXU).  Pad B up to a tile multiple so
    # the grid divides evenly; padded rows are sliced off at the end.
    TB = min(256, _round_up(B, 8))
    n_tiles = pl.cdiv(B, TB)
    Bp = n_tiles * TB
    x_p = x if Bp == B else jnp.pad(x, ((0, Bp - B), (0, 0)))

    # Weights/biases: whole-array VMEM blocks, constant index_map -> fetched
    # once and resident across all batch tiles.
    def const_spec(a):
        return pl.BlockSpec(a.shape, lambda i: (0,) * a.ndim)

    flops = 2 * Bp * (F * H1P + H1P * H2P + H2P * O)
    bytes_accessed = (
        x_p.size * x_p.dtype.itemsize
        + sum(a.size * a.dtype.itemsize for a in (w1, b1, w2, b2, w3, b3))
        + Bp * O * x.dtype.itemsize)

    out = pl.pallas_call(
        _mlp_kernel,
        out_shape=jax.ShapeDtypeStruct((Bp, O), x.dtype),
        grid=(n_tiles,),
        in_specs=[
            pl.BlockSpec((TB, F), lambda i: (i, 0)),
            const_spec(w1), const_spec(b1),
            const_spec(w2), const_spec(b2),
            const_spec(w3), const_spec(b3),
        ],
        out_specs=pl.BlockSpec((TB, O), lambda i: (i, 0)),
        compiler_params=pltpu.CompilerParams(
            dimension_semantics=("parallel",)),
        cost_estimate=pl.CostEstimate(
            flops=flops, transcendentals=0, bytes_accessed=bytes_accessed),
    )(x_p, w1, b1, w2, b2, w3, b3)

    return out[:B] if Bp != B else out


def init_params(key, num_feature, output_size, h1=600, h2=100):
    """PyTorch nn.Linear default init: U(-1/sqrt(fan_in), 1/sqrt(fan_in)).
    Weights stored (in_features, out_features) so the kernel does y = x @ W + b."""
    def linear(k, fan_in, fan_out):
        kw, kb = jax.random.split(k)
        bound = 1.0 / jnp.sqrt(jnp.float32(fan_in))
        w = jax.random.uniform(kw, (fan_in, fan_out), jnp.float32, -bound, bound)
        b = jax.random.uniform(kb, (1, fan_out), jnp.float32, -bound, bound)
        return w, b

    k1, k2, k3 = jax.random.split(key, 3)
    w1, b1 = linear(k1, num_feature, h1)
    w2, b2 = linear(k2, h1, h2)
    w3, b3 = linear(k3, h2, output_size)
    return (w1, b1, w2, b2, w3, b3)


def pad_and_cast_params(params):
    """Zero-pad hidden dims to lane multiples of 128 and cast weights to bf16.
    Padded rows/cols are exactly zero, so bias/ReLU epilogues stay exact."""
    w1, b1, w2, b2, w3, b3 = params
    h1, h2 = w1.shape[1], w2.shape[1]
    h1p, h2p = _round_up(h1, 128), _round_up(h2, 128)

    w1p = jnp.pad(w1, ((0, 0), (0, h1p - h1))).astype(jnp.bfloat16)
    b1p = jnp.pad(b1, ((0, 0), (0, h1p - h1)))                       # f32
    w2p = jnp.pad(w2, ((0, h1p - h1), (0, h2p - h2))).astype(jnp.bfloat16)
    b2p = jnp.pad(b2, ((0, 0), (0, h2p - h2)))                       # f32
    w3p = jnp.pad(w3, ((0, h2p - h2), (0, 0))).astype(jnp.bfloat16)
    b3p = b3                                                         # f32
    return (w1p, b1p, w2p, b2p, w3p, b3p)


if __name__ == "__main__":
    key = jax.random.PRNGKey(0)
    k_x, k_p = jax.random.split(key)

    batch = 384           # exercises grid=(2,) with TB=256 and batch padding
    num_feature = 32
    output_size = 8

    x = jax.random.normal(k_x, (batch, num_feature), jnp.float32)
    params = init_params(k_p, num_feature, output_size)
    padded = pad_and_cast_params(params)

    fwd = jax.jit(functools.partial(light_mlp1_forward))
    out = jax.block_until_ready(fwd(x, padded))

    # Reference with identical bf16-operand / f32-accumulate arithmetic
    # (dropout = identity in eval mode).
    w1, b1, w2, b2, w3, b3 = padded
    h = jnp.maximum(
        jnp.dot(x.astype(jnp.bfloat16), w1, preferred_element_type=jnp.float32) + b1, 0.0)
    h = jnp.maximum(
        jnp.dot(h.astype(jnp.bfloat16), w2, preferred_element_type=jnp.float32) + b2, 0.0)
    ref = jnp.dot(h.astype(jnp.bfloat16), w3, preferred_element_type=jnp.float32) + b3

    assert out.shape == (batch, output_size)
    assert jnp.allclose(out, ref, atol=1e-3, rtol=1e-3), (
        float(jnp.max(jnp.abs(out - ref))))

    print("KERNEL_OK")
</pallas_src>

<mosaic_0001>
module attributes {stable_mosaic.version = 11 : i64} {
  func.func @_mlp_kernel(%arg0: i32, %arg1: memref<256x32xf32, #tpu.memory_space<vmem>>, %arg2: memref<32x640xbf16, #tpu.memory_space<vmem>>, %arg3: memref<1x640xf32, #tpu.memory_space<vmem>>, %arg4: memref<640x128xbf16, #tpu.memory_space<vmem>>, %arg5: memref<1x128xf32, #tpu.memory_space<vmem>>, %arg6: memref<128x8xbf16, #tpu.memory_space<vmem>>, %arg7: memref<1x8xf32, #tpu.memory_space<vmem>>, %arg8: memref<256x8xf32, #tpu.memory_space<vmem>>) attributes {dimension_semantics = [#tpu.dimension_semantics<parallel>], iteration_bounds = array<i64: 2>, scalar_prefetch = 0 : i64, scratch_operands = 0 : i64, tpu.core_type = #tpu.core_type<tc>, window_params = [{transform_indices = @transform_0, window_bounds = array<i64: 256, 32>}, {pipeline_mode = #tpu.pipeline_mode<synchronous>, transform_indices = @transform_1, window_bounds = array<i64: 32, 640>}, {pipeline_mode = #tpu.pipeline_mode<synchronous>, transform_indices = @transform_2, window_bounds = array<i64: 1, 640>}, {pipeline_mode = #tpu.pipeline_mode<synchronous>, transform_indices = @transform_3, window_bounds = array<i64: 640, 128>}, {pipeline_mode = #tpu.pipeline_mode<synchronous>, transform_indices = @transform_4, window_bounds = array<i64: 1, 128>}, {pipeline_mode = #tpu.pipeline_mode<synchronous>, transform_indices = @transform_5, window_bounds = array<i64: 128, 8>}, {pipeline_mode = #tpu.pipeline_mode<synchronous>, transform_indices = @transform_6, window_bounds = array<i64: 1, 8>}, {transform_indices = @transform_7, window_bounds = array<i64: 256, 8>}]} {
    %c0 = arith.constant 0 : index
    %c0_0 = arith.constant 0 : index
    %0 = vector.load %arg1[%c0, %c0_0] : memref<256x32xf32, #tpu.memory_space<vmem>>, vector<256x32xf32>
    %1 = arith.truncf %0 : vector<256x32xf32> to vector<256x32xbf16>
    %c0_1 = arith.constant 0 : index
    %c0_2 = arith.constant 0 : index
    %2 = vector.load %arg2[%c0_1, %c0_2] : memref<32x640xbf16, #tpu.memory_space<vmem>>, vector<32x640xbf16>
    %cst = arith.constant dense<0.000000e+00> : vector<256x640xf32>
    %3 = tpu.matmul %1, %2, %cst {dimension_numbers = #tpu.dot_dimension_numbers<[1], [0], [0], [1], [0, 0, 1, 1], [], []>} : vector<256x32xbf16>, vector<32x640xbf16>, vector<256x640xf32> -> vector<256x640xf32>
    %c0_3 = arith.constant 0 : index
    %c0_4 = arith.constant 0 : index
    %4 = vector.load %arg3[%c0_3, %c0_4] : memref<1x640xf32, #tpu.memory_space<vmem>>, vector<1x640xf32>
    %5 = vector.broadcast %4 : vector<1x640xf32> to vector<256x640xf32>
    %6 = arith.addf %3, %5 : vector<256x640xf32>
    %cst_5 = arith.constant 0.000000e+00 : f32
    %7 = vector.broadcast %cst_5 : f32 to vector<256x640xf32>
    %8 = arith.maximumf %6, %7 : vector<256x640xf32>
    %9 = arith.truncf %8 : vector<256x640xf32> to vector<256x640xbf16>
    %c0_6 = arith.constant 0 : index
    %c0_7 = arith.constant 0 : index
    %10 = vector.load %arg4[%c0_6, %c0_7] : memref<640x128xbf16, #tpu.memory_space<vmem>>, vector<640x128xbf16>
    %cst_8 = arith.constant dense<0.000000e+00> : vector<256x128xf32>
    %11 = tpu.matmul %9, %10, %cst_8 {dimension_numbers = #tpu.dot_dimension_numbers<[1], [0], [0], [1], [0, 0, 1, 1], [], []>} : vector<256x640xbf16>, vector<640x128xbf16>, vector<256x128xf32> -> vector<256x128xf32>
    %c0_9 = arith.constant 0 : index
    %c0_10 = arith.constant 0 : index
    %12 = vector.load %arg5[%c0_9, %c0_10] : memref<1x128xf32, #tpu.memory_space<vmem>>, vector<1x128xf32>
    %13 = vector.broadcast %12 : vector<1x128xf32> to vector<256x128xf32>
    %14 = arith.addf %11, %13 : vector<256x128xf32>
    %cst_11 = arith.constant 0.000000e+00 : f32
    %15 = vector.broadcast %cst_11 : f32 to vector<256x128xf32>
    %16 = arith.maximumf %14, %15 : vector<256x128xf32>
    %17 = arith.truncf %16 : vector<256x128xf32> to vector<256x128xbf16>
    %c0_12 = arith.constant 0 : index
    %c0_13 = arith.constant 0 : index
    %18 = vector.load %arg6[%c0_12, %c0_13] : memref<128x8xbf16, #tpu.memory_space<vmem>>, vector<128x8xbf16>
    %cst_14 = arith.constant dense<0.000000e+00> : vector<256x8xf32>
    %19 = tpu.matmul %17, %18, %cst_14 {dimension_numbers = #tpu.dot_dimension_numbers<[1], [0], [0], [1], [0, 0, 1, 1], [], []>} : vector<256x128xbf16>, vector<128x8xbf16>, vector<256x8xf32> -> vector<256x8xf32>
    %c0_15 = arith.constant 0 : index
    %c0_16 = arith.constant 0 : index
    %20 = vector.load %arg7[%c0_15, %c0_16] : memref<1x8xf32, #tpu.memory_space<vmem>>, vector<1x8xf32>
    %21 = vector.broadcast %20 : vector<1x8xf32> to vector<256x8xf32>
    %22 = arith.addf %19, %21 : vector<256x8xf32>
    %c0_17 = arith.constant 0 : index
    %c0_18 = arith.constant 0 : index
    %23 = vector.load %arg8[%c0_17, %c0_18] : memref<256x8xf32, #tpu.memory_space<vmem>>, vector<256x8xf32>
    tpu.vector_store %arg8[%c0_17, %c0_18], %22 {strides = array<i32>} : memref<256x8xf32, #tpu.memory_space<vmem>>, vector<256x8xf32>,
    return
  }
  func.func @transform_0(%arg0: i32) -> (i32, i32) {
    %c0_i32 = arith.constant 0 : i32
    %c0_i32_0 = arith.constant 0 : i32
    return %arg0, %c0_i32 : i32, i32
  }
  func.func @transform_1(%arg0: i32) -> (i32, i32) {
    %c0_i32 = arith.constant 0 : i32
    %c0_i32_0 = arith.constant 0 : i32
    %c0_i32_1 = arith.constant 0 : i32
    return %c0_i32, %c0_i32_0 : i32, i32
  }
  func.func @transform_2(%arg0: i32) -> (i32, i32) {
    %c0_i32 = arith.constant 0 : i32
    %c0_i32_0 = arith.constant 0 : i32
    %c0_i32_1 = arith.constant 0 : i32
    return %c0_i32, %c0_i32_0 : i32, i32
  }
  func.func @transform_3(%arg0: i32) -> (i32, i32) {
    %c0_i32 = arith.constant 0 : i32
    %c0_i32_0 = arith.constant 0 : i32
    %c0_i32_1 = arith.constant 0 : i32
    return %c0_i32, %c0_i32_0 : i32, i32
  }
  func.func @transform_4(%arg0: i32) -> (i32, i32) {
    %c0_i32 = arith.constant 0 : i32
    %c0_i32_0 = arith.constant 0 : i32
    %c0_i32_1 = arith.constant 0 : i32
    return %c0_i32, %c0_i32_0 : i32, i32
  }
  func.func @transform_5(%arg0: i32) -> (i32, i32) {
    %c0_i32 = arith.constant 0 : i32
    %c0_i32_0 = arith.constant 0 : i32
    %c0_i32_1 = arith.constant 0 : i32
    return %c0_i32, %c0_i32_0 : i32, i32
  }
  func.func @transform_6(%arg0: i32) -> (i32, i32) {
    %c0_i32 = arith.constant 0 : i32
    %c0_i32_0 = arith.constant 0 : i32
    %c0_i32_1 = arith.constant 0 : i32
    return %c0_i32, %c0_i32_0 : i32, i32
  }
  func.func @transform_7(%arg0: i32) -> (i32, i32) {
    %c0_i32 = arith.constant 0 : i32
    %c0_i32_0 = arith.constant 0 : i32
    return %arg0, %c0_i32 : i32, i32
  }
}

</mosaic_0001>

<bundles_post_ra>
// kernel: light_mlp1_forward.1
= control target key start
LH: loop header
LB: loop body
LE: loop exit
PB: predicated region body
PF: predicated region fallthrough
CT: control target
= control target key end

     0   :  { %s2650_s24 = smov 0   ;;  %s3939_s0 = inlined_call_operand.vmem [shape: f32[512,32], index: 0, kind: input, shape index: {}]   ;;  %s3940_s1 = inlined_call_operand.vmem [shape: bf16[32,640], index: 1, kind: input, shape index: {}]   ;;  %s3941_s2 = inlined_call_operand.vmem [shape: f32[1,640], index: 2, kind: input, shape index: {}]   ;;  %s3942_s3 = inlined_call_operand.vmem [shape: bf16[640,128], index: 3, kind: input, shape index: {}]   ;;  %s3943_s4 = inlined_call_operand.vmem [shape: f32[1,128], index: 4, kind: input, shape index: {}]   ;;  %s3944_s5 = inlined_call_operand.vmem [shape: bf16[128,8], index: 5, kind: input, shape index: {}]   ;;  %s3945_s6 = inlined_call_operand.vmem [shape: f32[1,8], index: 6, kind: input, shape index: {}]   ;;  %s3946_s7 = inlined_call_operand.vmem [shape: f32[512,8], index: 7, kind: output, shape index: {}]  }
   0x1 LB: > { %s2204_s25 = sadd.s32 4294967295, %s2608_s24   ;;  %p2208_p0 = scmp.ge.s32.totalorder %s2608_s24, 1  ;;  %s2608_s24 = sphi %s2650_s24, %s17_s24  }
   0x2   : > { %p238_p1 = scmp.lt.s32.totalorder %s2608_s24, 3 }
   0x4   : > { %p239_p2 = pnand %p2208_p0, %p238_p1 }
   0x6   : > { %242 = sbr.rel (%p239_p2) target bundleno = 1006 (0x3ee), region = 48 }
   0xb   : > { %v2235_v0 = vld [vmem:[%s3940_s1 + $0x28] sm:$0xf]  ;;  %v2534_v1 = vld [vmem:[%s3940_s1 + $0x38] sm:$0xf0]  ;;  %v2532_v2 = vld [vmem:[%s3940_s1 + $0x2c] sm:$0xf] }
   0xc   : > { %v2236_v3 = vor.u32 %v2534_v1, %v2235_v0  ;;  %v2237_v4 = vld [vmem:[%s3940_s1 + $0x3c] sm:$0xf0]  ;;  %v2243_v5 = vld [vmem:[%s3940_s1 + $0x30] sm:$0xf]  ;;  %v2535_v6 = vld [vmem:[%s3940_s1 + $0x40] sm:$0xf0] }
   0xd   : > { %v2240_v7 = vor.u32 %v2532_v2, %v2237_v4  ;;  %v2244_v8 = vor.u32 %v2535_v6, %v2243_v5  ;;  %v2215_v9 = vld [vmem:[%s3940_s1] sm:$0xf]  ;;  %v2529_v10 = vld [vmem:[%s3940_s1 + $0x10] sm:$0xf0]  ;;  %v2527_v11 = vld [vmem:[%s3940_s1 + $0x4] sm:$0xf] }
   0xe   : > { %462 = vmatpush.bf16.msra.mxu0 %v2236_v3  ;;  %2585 = vmatpush.bf16.msra.mxu3 %v2236_v3  ;;  %v2216_v12 = vor.u32 %v2529_v10, %v2215_v9  ;;  %v2217_v13 = vld [vmem:[%s3940_s1 + $0x14] sm:$0xf0]  ;;  %v2223_v14 = vld [vmem:[%s3940_s1 + $0x8] sm:$0xf]  ;;  %v2530_v15 = vld [vmem:[%s3940_s1 + $0x18] sm:$0xf0] }
   0xf   : > { %551 = vmatpush.bf16.msra.mxu1 %v2240_v7  ;;  %640 = vmatpush.bf16.msra.mxu2 %v2244_v8  ;;  %v2220_v16 = vor.u32 %v2527_v11, %v2217_v13  ;;  %v2224_v17 = vor.u32 %v2530_v15, %v2223_v14  ;;  %s2209_s29 = sshll.u32 %s2204_s25, 5  ;;  %v2251_v18 = vld [vmem:[%s3940_s1 + $0x38] sm:$0xf]  ;;  %v2536_v19 = vld [vmem:[%s3940_s1 + $0x48] sm:$0xf0]  ;;  %vm407_vm0 = vcmask 261120  }
  0x10   : > { %p271_p3 = scmp.lt.s32.totalorder %s2209_s29, 63  ;;  %v2252_v20 = vor.u32 %v2536_v19, %v2251_v18  ;;  %v2544_v21 = vld [vmem:[%s3942_s3 + $0x38] sm:$0xff]  ;;  %v2543_v28 = vld [vmem:[%s3942_s3 + $0x30] sm:$0xff]  ;;  %v2542_v35 = vld [vmem:[%s3942_s3 + $0x28] sm:$0xff]  ;;  %vm2115_vm1 = vcmask 64512  }
  0x11   : > { %v2541_v48 = vld [vmem:[%s3942_s3 + $0x20] sm:$0xff]  ;;  %v2231_v52 = vld [vmem:[%s3940_s1 + $0x10] sm:$0xf]  ;;  %v2540_v54 = vld [vmem:[%s3942_s3 + $0x18] sm:$0xff] }
  0x12   : > { %463 = vmatpush.bf16.msra.mxu0 %v2216_v12  ;;  %2586 = vmatpush.bf16.msra.mxu3 %v2216_v12  ;;  %s4004_s29 = smov (!%p271_p3, %s2209_s29), 63  ;;  %v2531_v53 = vld [vmem:[%s3940_s1 + $0x20] sm:$0xf0]  ;;  %v2533_v62 = vld [vmem:[%s3940_s1 + $0x34] sm:$0xf]  ;;  %v2552_v5 = vld [vmem:[%s3942_s3 + $0x78] sm:$0xff] }
  0x13   : > { %552 = vmatpush.bf16.msra.mxu1 %v2220_v16  ;;  %641 = vmatpush.bf16.msra.mxu2 %v2224_v17  ;;  %s2210_s25 = sshll.u32 %s4004_s29, 3  ;;  %v2232_v55 = vor.u32 %v2531_v53, %v2231_v52  ;;  %v2245_v63 = vld [vmem:[%s3940_s1 + $0x44] sm:$0xf0]  ;;  %v2539_v0 = vld [vmem:[%s3942_s3 + $0x10] sm:$0xff]  ;;  %v2528_v12 = vld [vmem:[%s3940_s1 + $0xc] sm:$0xf] }
  0x14   : > { %s2711_s15 = scalar_lea.vmem %s3939_s0, %s2210_s25  ;;  %v2248_v1 = vor.u32 %v2533_v62, %v2245_v63  ;;  %v2538_v6 = vld [vmem:[%s3942_s3 + $0x8] sm:$0xff]  ;;  %v2225_v13 = vld [vmem:[%s3940_s1 + $0x1c] sm:$0xf0]  ;;  %v2551_v18 = vld [vmem:[%s3942_s3 + $0x70] sm:$0xff]  ;;  %s3813_s13 = scalar_lea.vmem %s3946_s7, %s2210_s25 }
  0x15   : > { %v283_v22 = vld [vmem:[%s2711_s15] sm:$0xff]  ;;  %v284_v23 = vld [vmem:[%s2711_s15 + $0x8] sm:$0xff]  ;;  %v285_v29 = vld [vmem:[%s2711_s15 + $0x10] sm:$0xff]  ;;  %v2228_v14 = vor.u32 %v2528_v12, %v2225_v13 }
  0x16   : > { %2587 = vmatpush.bf16.msrb.mxu3 %v2240_v7  ;;  %818 = vmatpush.bf16.msrb.mxu0 %v2252_v20  ;;  %v307_v24 = vld [vmem:[%s2711_s15 + $0xc0] sm:$0xff]  ;;  %v2716_v25 = vpack.c.bf16 %v284_v23, %v283_v22  ;;  %v308_v26 = vld [vmem:[%s2711_s15 + $0xc8] sm:$0xff]  ;;  %v286_v30 = vld [vmem:[%s2711_s15 + $0x18] sm:$0xff] }
  0x17   : > { %1465 = vmatpush.bf16.msrb.mxu1 %v2544_v21  ;;  %v2719_v27 = vpack.c.bf16 %v308_v26, %v307_v24  ;;  %v309_v31 = vld [vmem:[%s2711_s15 + $0xd0] sm:$0xff]  ;;  %v310_v32 = vld [vmem:[%s2711_s15 + $0xd8] sm:$0xff]  ;;  %v2736_v33 = vpack.c.bf16 %v286_v30, %v285_v29  ;;  %v287_v36 = vld [vmem:[%s2711_s15 + $0x20] sm:$0xff]  ;;  %1554 = vmatpush.bf16.msrb.mxu2 %v2552_v5 }
  0x18   : > { %2253 = vmatmul.msk.bf16.vlgmr.msra.gmra.mxu0 %vm407_vm0, %v2716_v25  ;;  %2269 = vmatmul.msk.bf16.vlgmr.msra.gmra.mxu1 %vm407_vm0, %v2716_v25  ;;  %v2738_v34 = vpack.c.bf16 %v310_v32, %v309_v31  ;;  %v288_v37 = vld [vmem:[%s2711_s15 + $0x28] sm:$0xff]  ;;  %v311_v38 = vld [vmem:[%s2711_s15 + $0xe0] sm:$0xff]  ;;  %v289_v42 = vld [vmem:[%s2711_s15 + $0x30] sm:$0xff] }
  0x19   : > { %2265 = vmatmul.msk.bf16.vlgmr.msra.gmra.mxu3 %vm407_vm0, %v2719_v27  ;;  %2285 = vmatmul.msk.bf16.vlgmr.msra.gmra.mxu2 %vm407_vm0, %v2716_v25  ;;  %v312_v39 = vld [vmem:[%s2711_s15 + $0xe8] sm:$0xff]  ;;  %v2755_v40 = vpack.c.bf16 %v288_v37, %v287_v36  ;;  %v290_v43 = vld [vmem:[%s2711_s15 + $0x38] sm:$0xff]  ;;  %v313_v44 = vld [vmem:[%s2711_s15 + $0xf0] sm:$0xff] }
  0x1a   : > { %2588 = vmatpush.bf16.msrb.mxu3 %v2220_v16  ;;  %v2757_v41 = vpack.c.bf16 %v312_v39, %v311_v38  ;;  %v314_v45 = vld [vmem:[%s2711_s15 + $0xf8] sm:$0xff]  ;;  %v2771_v46 = vpack.c.bf16 %v290_v43, %v289_v42  ;;  %v291_v49 = vld [vmem:[%s2711_s15 + $0x40] sm:$0xff]  ;;  %v292_v50 = vld [vmem:[%s2711_s15 + $0x48] sm:$0xff]  ;;  %819 = vmatpush.bf16.msrb.mxu0 %v2232_v55 }
  0x1b   : > { %1466 = vmatpush.bf16.msrb.mxu1 %v2543_v28  ;;  %v2773_v47 = vpack.c.bf16 %v314_v45, %v313_v44  ;;  %v2788_v51 = vpack.c.bf16 %v292_v50, %v291_v49  ;;  %v293_v56 = vld [vmem:[%s2711_s15 + $0x50] sm:$0xff]  ;;  %v294_v57 = vld [vmem:[%s2711_s15 + $0x58] sm:$0xff]  ;;  %v295_v59 = vld [vmem:[%s2711_s15 + $0x60] sm:$0xff]  ;;  %1555 = vmatpush.bf16.msrb.mxu2 %v2551_v18 }
  0x1c   : > { %3951 = vst [vmem:[#allocation2_spill] sm:$0xff] %v2757_v41  ;;  %v2809_v58 = vpack.c.bf16 %v294_v57, %v293_v56  ;;  %v296_v60 = vld [vmem:[%s2711_s15 + $0x68] sm:$0xff]  ;;  %v297_v2 = vld [vmem:[%s2711_s15 + $0x70] sm:$0xff]  ;;  %v298_v3 = vld [vmem:[%s2711_s15 + $0x78] sm:$0xff] }
  0x1d   : > { %3952 = vst [vmem:[#allocation3_spill] sm:$0xff] %v2773_v47  ;;  %v2821_v61 = vpack.c.bf16 %v296_v60, %v295_v59  ;;  %v2842_v4 = vpack.c.bf16 %v298_v3, %v297_v2  ;;  %v299_v7 = vld [vmem:[%s2711_s15 + $0x80] sm:$0xff]  ;;  %v2550_v23 = vld [vmem:[%s3942_s3 + $0x68] sm:$0xff]  ;;  %v301_v26 = vld [vmem:[%s2711_s15 + $0x90] sm:$0xff] }
  0x1e   : > { %2589 = vmatpush.bf16.msra.mxu3 %v2244_v8  ;;  %v300_v8 = vld [vmem:[%s2711_s15 + $0x88] sm:$0xff]  ;;  %v2883_v15 = vld [vmem:[%s3941_s2] sm:$0x1f]  ;;  %v302_v28 = vld [vmem:[%s2711_s15 + $0x98] sm:$0xff] }
  0x1f   : > { %1467 = vmatpush.bf16.msrb.mxu1 %v2542_v35  ;;  %v2860_v9 = vpack.c.bf16 %v300_v8, %v299_v7  ;;  %v2893_v21 = vperm.slane %v2883_v15, 0  ;;  %v2896_v22 = vperm.slane %v2883_v15, 2  ;;  %1556 = vmatpush.bf16.msrb.mxu2 %v2550_v23  ;;  %v2905_v32 = vpack.c.bf16 %v302_v28, %v301_v26  ;;  %v2549_v35 = vld [vmem:[%s3942_s3 + $0x60] sm:$0xff]  ;;  %v2547_v55 = vld [vmem:[%s3942_s3 + $0x50] sm:$0xff]  ;;  %v2546_v59 = vld [vmem:[%s3942_s3 + $0x48] sm:$0xff] }
  0x20   : > { %v2537_v50 = vld [vmem:[%s3942_s3] sm:$0xff]  ;;  %v304_v62 = vld [vmem:[%s2711_s15 + $0xa8] sm:$0xff]  ;;  %v2560_v13 = vld [vmem:[%s3942_s3 + $0xb8] sm:$0xff] }
  0x21   : > { %v303_v60 = vld [vmem:[%s2711_s15 + $0xa0] sm:$0xff]  ;;  %v2576_v26 = vld [vmem:[%s3942_s3 + $0x138] sm:$0xff]  ;;  %v305_v28 = vld [vmem:[%s2711_s15 + $0xb0] sm:$0xff] }
  0x22   : > { %2590 = vmatpush.bf16.msra.mxu3 %v2224_v17  ;;  %v2951_v2 = vpack.c.bf16 %v304_v62, %v303_v60  ;;  %v2545_v3 = vld [vmem:[%s3942_s3 + $0x40] sm:$0xff] }
  0x23   : > { %1468 = vmatpush.bf16.msrb.mxu1 %v2541_v48  ;;  %1557 = vmatpush.bf16.msrb.mxu2 %v2549_v35  ;;  %v2548_v48 = vld [vmem:[%s3942_s3 + $0x58] sm:$0xff] }
  0x27   : > { %1469 = vmatpush.bf16.msrb.mxu1 %v2540_v54  ;;  %1558 = vmatpush.bf16.msrb.mxu2 %v2548_v48 }
  0x28   : > { %2254 = vmatmul.msk.bf16.gmra.mxu0 %vm407_vm0, %v2736_v33  ;;  %2270 = vmatmul.msk.bf16.gmra.mxu1 %vm407_vm0, %v2736_v33 }
  0x29   : > { %2266 = vmatmul.msk.bf16.gmra.mxu3 %vm407_vm0, %v2738_v34  ;;  %2286 = vmatmul.msk.bf16.gmra.mxu2 %vm407_vm0, %v2736_v33 }
  0x2b   : > { %1470 = vmatpush.bf16.msrb.mxu1 %v2539_v0  ;;  %1559 = vmatpush.bf16.msrb.mxu2 %v2547_v55 }
  0x2f   : > { %1471 = vmatpush.bf16.msrb.mxu1 %v2538_v6  ;;  %1560 = vmatpush.bf16.msrb.mxu2 %v2546_v59 }
  0x33   : > { %1472 = vmatpush.bf16.msrb.mxu1 %v2537_v50  ;;  %1561 = vmatpush.bf16.msrb.mxu2 %v2545_v3  ;;  %v3009_v50 = vperm.slane %v2883_v15, 1 }
  0x37   : > { %1821 = vmatpush.bf16.msra.mxu1 %v2576_v26 }
  0x38   : > { %2255 = vmatmul.msk.bf16.gmra.mxu0 %vm407_vm0, %v2755_v40  ;;  %2271 = vmatmul.msk.bf16.gmra.mxu1 %vm407_vm0, %v2755_v40 }
  0x39   : > { %2267 = vmatmul.msk.bf16.gmra.mxu3 %vm407_vm0, %v2757_v41  ;;  %2287 = vmatmul.msk.bf16.gmra.mxu2 %vm407_vm0, %v2755_v40 }
  0x48   : > { %2256 = vmatmul.msk.bf16.gmra.mxu0 %vm407_vm0, %v2771_v46  ;;  %2272 = vmatmul.msk.bf16.gmra.mxu1 %vm407_vm0, %v2771_v46 }
  0x49   : > { %2268 = vmatmul.msk.bf16.gmra.mxu3 %vm407_vm0, %v2773_v47  ;;  %2288 = vmatmul.msk.bf16.gmra.mxu2 %vm407_vm0, %v2771_v46 }
  0x58   : > { %2257 = vmatmul.msk.bf16.gmra.mxu0 %vm407_vm0, %v2788_v51  ;;  %2273 = vmatmul.msk.bf16.gmra.mxu1 %vm407_vm0, %v2788_v51 }
  0x59   : > { %2281 = vmatmul.msk.bf16.vlgmr.msrb.gmra.mxu3 %vm407_vm0, %v2719_v27  ;;  %2289 = vmatmul.msk.bf16.gmra.mxu2 %vm407_vm0, %v2788_v51 }
  0x5a   : > { %729 = vmatpush.bf16.msrb.mxu3 %v2248_v1 }
  0x5e   : > { %730 = vmatpush.bf16.msrb.mxu3 %v2228_v14 }
  0x68   : > { %2258 = vmatmul.msk.bf16.gmra.mxu0 %vm407_vm0, %v2809_v58  ;;  %2274 = vmatmul.msk.bf16.gmra.mxu1 %vm407_vm0, %v2809_v58 }
  0x69   : > { %2282 = vmatmul.msk.bf16.gmra.mxu3 %vm407_vm0, %v2738_v34  ;;  %2290 = vmatmul.msk.bf16.gmra.mxu2 %vm407_vm0, %v2809_v58 }
  0x78   : > { %2259 = vmatmul.msk.bf16.gmra.mxu0 %vm407_vm0, %v2821_v61  ;;  %2275 = vmatmul.msk.bf16.gmra.mxu1 %vm407_vm0, %v2821_v61 }
  0x79   : > { %2283 = vmatmul.msk.bf16.gmra.mxu3 %vm407_vm0, %v2757_v41  ;;  %2291 = vmatmul.msk.bf16.gmra.mxu2 %vm407_vm0, %v2821_v61 }
  0x88   : > { %2260 = vmatmul.msk.bf16.gmra.mxu0 %vm407_vm0, %v2842_v4  ;;  %2276 = vmatmul.msk.bf16.gmra.mxu1 %vm407_vm0, %v2842_v4 }
  0x89   : > { %2284 = vmatmul.msk.bf16.gmra.mxu3 %vm407_vm0, %v2773_v47  ;;  %2292 = vmatmul.msk.bf16.gmra.mxu2 %vm407_vm0, %v2842_v4 }
  0x95   : > { %v2862_v10 = vpop.f32.mrf.mxu0  ;;  %v2864_v11 = vpop.f32.mrf.mxu1 }
  0x96   : > { %v466_v62 = vadd.f32 %v2862_v10, %v2893_v21 }
  0x98   : > { %2261 = vmatmul.msk.bf16.gmra.mxu0 %vm407_vm0, %v2860_v9  ;;  %2277 = vmatmul.msk.bf16.gmra.mxu1 %vm407_vm0, %v2860_v9 }
  0x99   : > { %2293 = vmatmul.msk.bf16.gmra.mxu2 %vm407_vm0, %v2860_v9  ;;  %2297 = vmatmul.msk.bf16.vlgmr.msra.gmra.mxu3 %vm407_vm0, %v2719_v27 }
  0x9a   : > { %1643 = vmatpush.bf16.msra.mxu3 %v2560_v13 }
  0x9c   : > { %v525_v16 = vpop.f32.mrf.mxu3  ;;  %v643_v17 = vpop.f32.mrf.mxu2 }
  0x9d   : > { %v2888_v19 = vpop.f32.mrf.mxu0  ;;  %v2890_v20 = vpop.f32.mrf.mxu1  ;;  %v644_v24 = vadd.f32 %v643_v17, %v2896_v22  ;;  %v526_v29 = vadd.f32 %v525_v16, %v2893_v21 }
  0x9e   : > { %v557_v3 = vadd.f32 %v2890_v20, %v3009_v50  ;;  %v2559_v20 = vld [vmem:[%s3942_s3 + $0xb0] sm:$0xff] }
  0x9f   : > { %v903_v36 = vmax.f32 %v644_v24, 0.0  ;;  %v1021_v43 = vmax.f32 %v526_v29, 0.0  ;;  %v2568_v24 = vld [vmem:[%s3942_s3 + $0xf8] sm:$0xff]  ;;  %1644 = vmatpush.bf16.msra.mxu3 %v2559_v20 }
  0xa0   : > { %v306_v29 = vld [vmem:[%s2711_s15 + $0xb8] sm:$0xff]  ;;  %1732 = vmatpush.bf16.msra.mxu0 %v2568_v24  ;;  %v907_v13 = vmax.f32 %v557_v3, 0.0 }
  0xa4   : > { %v527_v30 = vpop.f32.mrf.mxu3  ;;  %v645_v31 = vpop.f32.mrf.mxu2 }
  0xa5   : > { %v528_v37 = vadd.f32 %v527_v30, %v2893_v21  ;;  %v646_v38 = vadd.f32 %v645_v31, %v2896_v22  ;;  %v2912_v39 = vpop.f32.mrf.mxu0  ;;  %v2914_v42 = vpop.f32.mrf.mxu1 }
  0xa7   : > { %v1026_v44 = vmax.f32 %v528_v37, 0.0  ;;  %v908_v45 = vmax.f32 %v646_v38, 0.0 }
  0xa8   : > { %2262 = vmatmul.msk.bf16.gmra.mxu0 %vm407_vm0, %v2905_v32  ;;  %2278 = vmatmul.msk.bf16.gmra.mxu1 %vm407_vm0, %v2905_v32 }
  0xa9   : > { %v2923_v49 = vpack.c.bf16 %v908_v45, %v903_v36  ;;  %2294 = vmatmul.msk.bf16.gmra.mxu2 %vm407_vm0, %v2905_v32  ;;  %2298 = vmatmul.msk.bf16.gmra.mxu3 %vm407_vm0, %v2738_v34  ;;  %v2932_v52 = vpack.c.bf16 %v1026_v44, %v1021_v43  ;;  %v2991_v36 = vpack.c.bf16 %v306_v29, %v305_v28 }
  0xab   : > { %3953 = vst [vmem:[#allocation4_spill] sm:$0xff] %v2923_v49 }
  0xac   : > { %v530_v53 = vpop.f32.mrf.mxu3  ;;  %v2934_v54 = vpop.f32.mrf.mxu2 }
  0xad   : > { %v2939_v56 = vpop.f32.mrf.mxu0  ;;  %v2941_v57 = vpop.f32.mrf.mxu1  ;;  %v531_v63 = vadd.f32 %v530_v53, %v2893_v21 }
  0xae   : > { %v562_v3 = vadd.f32 %v2941_v57, %v3009_v50 }
  0xaf   : > { %v1031_v8 = vmax.f32 %v531_v63, 0.0  ;;  %v468_v63 = vadd.f32 %v2888_v19, %v2893_v21 }
  0xb4   : > { %v532_v0 = vpop.f32.mrf.mxu3  ;;  %v2949_v1 = vpop.f32.mrf.mxu2 }
  0xb5   : > { %v533_v5 = vadd.f32 %v532_v0, %v2893_v21  ;;  %v2957_v6 = vpop.f32.mrf.mxu0  ;;  %v2959_v7 = vpop.f32.mrf.mxu1  ;;  %v555_v0 = vadd.f32 %v2864_v11, %v3009_v50 }
  0xb7   : > { %v1036_v12 = vmax.f32 %v533_v5, 0.0  ;;  %v901_v5 = vmax.f32 %v466_v62, 0.0 }
  0xb8   : > { %2263 = vmatmul.msk.bf16.gmra.mxu0 %vm407_vm0, %v2951_v2  ;;  %2279 = vmatmul.msk.bf16.gmra.mxu1 %vm407_vm0, %v2951_v2 }
  0xb9   : > { %2295 = vmatmul.msk.bf16.gmra.mxu2 %vm407_vm0, %v2951_v2  ;;  %2299 = vmatmul.msk.bf16.gmra.mxu3 %vm407_vm0, %v2757_v41  ;;  %v2972_v14 = vpack.c.bf16 %v1036_v12, %v1031_v8  ;;  %v906_v8 = vmax.f32 %v468_v63, 0.0  ;;  %v902_v12 = vmax.f32 %v555_v0, 0.0  ;;  %v471_v63 = vadd.f32 %v2912_v39, %v2893_v21 }
  0xba   : > { %v560_v0 = vadd.f32 %v2914_v42, %v3009_v50 }
  0xbb   : > { %v1061_v29 = vpack.c.bf16 %v906_v8, %v901_v5  ;;  %v1062_v11 = vpack.c.bf16 %v907_v13, %v902_v12  ;;  %v2567_v5 = vld [vmem:[%s3942_s3 + $0xf0] sm:$0xff]  ;;  %v911_v12 = vmax.f32 %v471_v63, 0.0 }
  0xbc   : > { %v535_v16 = vpop.f32.mrf.mxu3  ;;  %v2974_v17 = vpop.f32.mrf.mxu2  ;;  %v2575_v8 = vld [vmem:[%s3942_s3 + $0x130] sm:$0xff]  ;;  %1733 = vmatpush.bf16.msra.mxu0 %v2567_v5  ;;  %v912_v39 = vmax.f32 %v560_v0, 0.0  ;;  %v476_v5 = vadd.f32 %v2957_v6, %v2893_v21 }
  0xbd   : > { %v2976_v18 = vpop.f32.mrf.mxu0  ;;  %v2978_v23 = vpop.f32.mrf.mxu1  ;;  %v536_v30 = vadd.f32 %v535_v16, %v2893_v21  ;;  %1822 = vmatpush.bf16.msra.mxu1 %v2575_v8 }
  0xbe   : > { %v478_v8 = vadd.f32 %v2976_v18, %v2893_v21 }
  0xbf   : > { %v1041_v44 = vmax.f32 %v536_v30, 0.0 }
  0xc4   : > { %v537_v31 = vpop.f32.mrf.mxu3  ;;  %v2989_v35 = vpop.f32.mrf.mxu2 }
  0xc5   : > { %v538_v37 = vadd.f32 %v537_v31, %v2893_v21  ;;  %v2994_v38 = vpop.f32.mrf.mxu0  ;;  %v2996_v43 = vpop.f32.mrf.mxu1 }
  0xc7   : > { %v1046_v45 = vmax.f32 %v538_v37, 0.0 }
  0xc8   : > { %2264 = vmatmul.msk.bf16.gmra.mxu0 %vm407_vm0, %v2991_v36  ;;  %2280 = vmatmul.msk.bf16.gmra.mxu1 %vm407_vm0, %v2991_v36 }
  0xc9   : > { %2296 = vmatmul.msk.bf16.gmra.mxu2 %vm407_vm0, %v2991_v36  ;;  %2300 = vmatmul.msk.bf16.gmra.mxu3 %vm407_vm0, %v2773_v47  ;;  %v3006_v48 = vpack.c.bf16 %v1046_v45, %v1041_v44 }
  0xcb   : > { %3954 = vst [vmem:[#allocation5_spill] sm:$0xff] %v3006_v48 }
  0xcc   : > { %v540_v53 = vpop.f32.mrf.mxu3  ;;  %v3011_v55 = vpop.f32.mrf.mxu2 }
  0xcd   : > { %v3013_v59 = vpop.f32.mrf.mxu0  ;;  %v3015_v60 = vpop.f32.mrf.mxu1  ;;  %v541_v16 = vadd.f32 %v540_v53, %v2893_v21 }
  0xcf   : > { %v1051_v30 = vmax.f32 %v541_v16, 0.0 }
  0xd4   : > { %v542_v24 = vpop.f32.mrf.mxu3  ;;  %v3026_v26 = vpop.f32.mrf.mxu2 }
  0xd5   : > { %v543_v10 = vadd.f32 %v542_v24, %v2893_v21  ;;  %v3029_v28 = vpop.f32.mrf.mxu0  ;;  %v3031_v19 = vpop.f32.mrf.mxu1 }
  0xd7   : > { %v1056_v31 = vmax.f32 %v543_v10, 0.0 }
  0xd8   : > { %2317 = vmatmul.msk.bf16.vlgmr.msrb.gmra.mxu0 %vm407_vm0, %v2716_v25  ;;  %1473 = vmatmul.bf16.vlgmr.msrb.gmra.mxu1 %v1061_v29 }
  0xd9   : > { %2301 = vmatmul.msk.bf16.vlgmr.msrb.gmra.mxu3 %vm407_vm0, %v2716_v25  ;;  %1562 = vmatmul.bf16.vlgmr.msrb.gmra.mxu2 %v1062_v11  ;;  %v3040_v37 = vpack.c.bf16 %v1056_v31, %v1051_v30  ;;  %v473_v25 = vadd.f32 %v2939_v56, %v2893_v21  ;;  %v917_v56 = vmax.f32 %v562_v3, 0.0 }
  0xdb   : > { %3955 = vst [vmem:[#allocation6_spill] sm:$0xff] %v3040_v37  ;;  %v916_v13 = vmax.f32 %v473_v25, 0.0  ;;  %v1067_v20 = vpack.c.bf16 %v917_v56, %v912_v39  ;;  %v926_v39 = vmax.f32 %v478_v8, 0.0 }
  0xdc   : > { %v614_v44 = vpop.f32.mrf.mxu3  ;;  %v3042_v45 = vpop.f32.mrf.mxu2 }
  0xdd   : > { %v3044_v53 = vpop.f32.mrf.mxu0  ;;  %v3046_v62 = vpop.f32.mrf.mxu1  ;;  %v615_v16 = vadd.f32 %v614_v44, %v3009_v50  ;;  %v1066_v11 = vpack.c.bf16 %v916_v13, %v911_v12  ;;  %v565_v12 = vadd.f32 %v2959_v7, %v3009_v50  ;;  %v921_v13 = vmax.f32 %v476_v5, 0.0 }
  0xdf   : > { %v1022_v30 = vmax.f32 %v615_v16, 0.0  ;;  %v922_v56 = vmax.f32 %v565_v12, 0.0 }
  0xe4   : > { %v616_v42 = vpop.f32.mrf.mxu3  ;;  %v3063_v24 = vpop.f32.mrf.mxu2 }
  0xe5   : > { %v617_v57 = vadd.f32 %v616_v42, %v3009_v50  ;;  %v3066_v10 = vpop.f32.mrf.mxu0  ;;  %v3068_v29 = vpop.f32.mrf.mxu1 }
  0xe7   : > { %v1027_v31 = vmax.f32 %v617_v57, 0.0 }
  0xe8   : > { %2318 = vmatmul.msk.bf16.gmra.mxu0 %vm407_vm0, %v2736_v33  ;;  %1478 = vmatmul.bf16.gmra.mxu1 %v1066_v11 }
  0xe9   : > { %2302 = vmatmul.msk.bf16.gmra.mxu3 %vm407_vm0, %v2736_v33  ;;  %1567 = vmatmul.bf16.gmra.mxu2 %v1067_v20  ;;  %v3074_v44 = vpack.c.bf16 %v1027_v31, %v1022_v30  ;;  %v567_v33 = vadd.f32 %v2978_v23, %v3009_v50  ;;  %v1071_v31 = vpack.c.bf16 %v926_v39, %v921_v13  ;;  %v2558_v23 = vld [vmem:[%s3942_s3 + $0xa8] sm:$0xff] }
  0xea   : > { %1645 = vmatpush.bf16.msra.mxu3 %v2558_v23  ;;  %v481_v13 = vadd.f32 %v2994_v38, %v2893_v21  ;;  %v572_v39 = vadd.f32 %v3015_v60, %v3009_v50 }
  0xeb   : > { %v927_v16 = vmax.f32 %v567_v33, 0.0 }
  0xec   : > { %v619_v63 = vpop.f32.mrf.mxu3  ;;  %v3076_v25 = vpop.f32.mrf.mxu2 }
  0xed   : > { %v3078_v0 = vpop.f32.mrf.mxu0  ;;  %v3080_v3 = vpop.f32.mrf.mxu1  ;;  %v620_v42 = vadd.f32 %v619_v63, %v3009_v50  ;;  %v1072_v49 = vpack.c.bf16 %v927_v16, %v922_v56  ;;  %v2566_v56 = vld [vmem:[%s3942_s3 + $0xe8] sm:$0xff] }
  0xee   : > { %v2574_v16 = vld [vmem:[%s3942_s3 + $0x128] sm:$0xff]  ;;  %1734 = vmatpush.bf16.msra.mxu0 %v2566_v56 }
  0xef   : > { %v1032_v7 = vmax.f32 %v620_v42, 0.0  ;;  %v931_v42 = vmax.f32 %v481_v13, 0.0  ;;  %1823 = vmatpush.bf16.msra.mxu1 %v2574_v16  ;;  %v486_v16 = vadd.f32 %v3029_v28, %v2893_v21 }
  0xf4   : > { %v621_v57 = vpop.f32.mrf.mxu3  ;;  %v3091_v11 = vpop.f32.mrf.mxu2 }
  0xf5   : > { %v622_v6 = vadd.f32 %v621_v57, %v3009_v50  ;;  %v3094_v30 = vpop.f32.mrf.mxu0  ;;  %v3096_v18 = vpop.f32.mrf.mxu1 }
  0xf7   : > { %v1037_v20 = vmax.f32 %v622_v6, 0.0 }
  0xf8   : > { %2319 = vmatmul.msk.bf16.gmra.mxu0 %vm407_vm0, %v2755_v40  ;;  %1483 = vmatmul.bf16.gmra.mxu1 %v1071_v31 }
  0xf9   : > { %2303 = vmatmul.msk.bf16.gmra.mxu3 %vm407_vm0, %v2755_v40  ;;  %1572 = vmatmul.bf16.gmra.mxu2 %v1072_v49  ;;  %v3105_v63 = vpack.c.bf16 %v1037_v20, %v1032_v7  ;;  %v483_v40 = vadd.f32 %v3013_v59, %v2893_v21  ;;  %v570_v49 = vadd.f32 %v2996_v43, %v3009_v50  ;;  %v937_v59 = vmax.f32 %v572_v39, 0.0 }
  0xfb   : > { %v936_v57 = vmax.f32 %v483_v40, 0.0  ;;  %v932_v38 = vmax.f32 %v570_v49, 0.0 }
  0xfc   : > { %v624_v5 = vpop.f32.mrf.mxu3  ;;  %v3107_v8 = vpop.f32.mrf.mxu2 }
  0xfd   : > { %v3109_v12 = vpop.f32.mrf.mxu0  ;;  %v3111_v33 = vpop.f32.mrf.mxu1  ;;  %v625_v6 = vadd.f32 %v624_v5, %v3009_v50  ;;  %v1076_v23 = vpack.c.bf16 %v936_v57, %v931_v42  ;;  %v1077_v13 = vpack.c.bf16 %v937_v59, %v932_v38  ;;  %v488_v42 = vadd.f32 %v3044_v53, %v2893_v21 }
  0xfe   : > { %v575_v57 = vadd.f32 %v3031_v19, %v3009_v50 }
  0xff   : > { %v1042_v37 = vmax.f32 %v625_v6, 0.0 }
 0x100   : > { %v942_v38 = vmax.f32 %v575_v57, 0.0 }
 0x104   : > { %v626_v43 = vpop.f32.mrf.mxu3  ;;  %v3128_v31 = vpop.f32.mrf.mxu2 }
 0x105   : > { %v627_v60 = vadd.f32 %v626_v43, %v3009_v50  ;;  %v3131_v7 = vpop.f32.mrf.mxu0  ;;  %v3133_v20 = vpop.f32.mrf.mxu1 }
 0x107   : > { %v1047_v47 = vmax.f32 %v627_v60, 0.0 }
 0x108   : > { %2320 = vmatmul.msk.bf16.gmra.mxu0 %vm407_vm0, %v2771_v46  ;;  %1488 = vmatmul.bf16.gmra.mxu1 %v1076_v23 }
 0x109   : > { %2304 = vmatmul.msk.bf16.gmra.mxu3 %vm407_vm0, %v2771_v46  ;;  %1577 = vmatmul.bf16.gmra.mxu2 %v1077_v13  ;;  %v3139_v5 = vpack.c.bf16 %v1047_v47, %v1042_v37  ;;  %v577_v46 = vadd.f32 %v3046_v62, %v3009_v50  ;;  %v941_v47 = vmax.f32 %v486_v16, 0.0  ;;  %v946_v37 = vmax.f32 %v488_v42, 0.0  ;;  %v2557_v62 = vld [vmem:[%s3942_s3 + $0xa0] sm:$0xff] }
 0x10a   : > { %1646 = vmatpush.bf16.msra.mxu3 %v2557_v62 }
 0x10b   : > { %3956 = vst [vmem:[#allocation7_spill] sm:$0xff] %v3139_v5  ;;  %v947_v59 = vmax.f32 %v577_v46, 0.0  ;;  %v1081_v13 = vpack.c.bf16 %v946_v37, %v941_v47  ;;  %v649_v47 = vadd.f32 %v2934_v54, %v2896_v22  ;;  %v580_v37 = vadd.f32 %v3068_v29, %v3009_v50  ;;  %v2573_v54 = vld [vmem:[%s3942_s3 + $0x120] sm:$0xff] }
 0x10c   : > { %v629_v40 = vpop.f32.mrf.mxu3  ;;  %v3141_v49 = vpop.f32.mrf.mxu2  ;;  %1824 = vmatpush.bf16.msra.mxu1 %v2573_v54 }
 0x10d   : > { %v3143_v39 = vpop.f32.mrf.mxu0  ;;  %v3145_v56 = vpop.f32.mrf.mxu1  ;;  %v630_v6 = vadd.f32 %v629_v40, %v3009_v50  ;;  %v1082_v48 = vpack.c.bf16 %v947_v59, %v942_v38  ;;  %v582_v38 = vadd.f32 %v3080_v3, %v3009_v50  ;;  %v2565_v59 = vld [vmem:[%s3942_s3 + $0xe0] sm:$0xff] }
 0x10e   : > { %1735 = vmatpush.bf16.msra.mxu0 %v2565_v59 }
 0x10f   : > { %v1052_v19 = vmax.f32 %v630_v6, 0.0 }
 0x114   : > { %v631_v43 = vpop.f32.mrf.mxu3  ;;  %v3156_v60 = vpop.f32.mrf.mxu2 }
 0x115   : > { %v632_v28 = vadd.f32 %v631_v43, %v3009_v50  ;;  %v3159_v23 = vpop.f32.mrf.mxu0  ;;  %v3161_v53 = vpop.f32.mrf.mxu1  ;;  %v952_v43 = vmax.f32 %v580_v37, 0.0 }
 0x117   : > { %v1057_v5 = vmax.f32 %v632_v28, 0.0  ;;  %v957_v28 = vmax.f32 %v582_v38, 0.0 }
 0x118   : > { %2321 = vmatmul.msk.bf16.gmra.mxu0 %vm407_vm0, %v2788_v51  ;;  %1493 = vmatmul.bf16.gmra.mxu1 %v1081_v13 }
 0x119   : > { %2305 = vmatmul.msk.bf16.gmra.mxu3 %vm407_vm0, %v2788_v51  ;;  %1582 = vmatmul.bf16.gmra.mxu2 %v1082_v48  ;;  %v3170_v40 = vpack.c.bf16 %v1057_v5, %v1052_v19  ;;  %v491_v51 = vadd.f32 %v3066_v10, %v2893_v21  ;;  %v493_v48 = vadd.f32 %v3078_v0, %v2893_v21  ;;  %v913_v10 = vmax.f32 %v649_v47, 0.0 }
 0x11a   : > { %v651_v5 = vadd.f32 %v2949_v1, %v2896_v22 }
 0x11b   : > { %3957 = vst [vmem:[#allocation8_spill] sm:$0xff] %v3170_v40  ;;  %v951_v6 = vmax.f32 %v491_v51, 0.0  ;;  %v956_v0 = vmax.f32 %v493_v48, 0.0  ;;  %v1087_v48 = vpack.c.bf16 %v957_v28, %v952_v43 }
 0x11c   : > { %v3172_v16 = vpop.f32.mrf.mxu2  ;;  %v703_v42 = vpop.f32.mrf.mxu3  ;;  %v918_v1 = vmax.f32 %v651_v5, 0.0 }
 0x11d   : > { %v3174_v57 = vpop.f32.mrf.mxu0  ;;  %v3176_v46 = vpop.f32.mrf.mxu1  ;;  %v704_v29 = vadd.f32 %v703_v42, %v2896_v22  ;;  %v1086_v41 = vpack.c.bf16 %v956_v0, %v951_v6  ;;  %v496_v6 = vadd.f32 %v3094_v30, %v2893_v21  ;;  %v585_v0 = vadd.f32 %v3096_v18, %v3009_v50 }
 0x11e   : > { %v3204_v59 = vpack.c.bf16 %v918_v1, %v913_v10  ;;  %v654_v10 = vadd.f32 %v2974_v17, %v2896_v22  ;;  %v587_v1 = vadd.f32 %v3111_v33, %v3009_v50 }
 0x11f   : > { %v1023_v47 = vmax.f32 %v704_v29, 0.0  ;;  %v961_v28 = vmax.f32 %v496_v6, 0.0  ;;  %v962_v17 = vmax.f32 %v585_v0, 0.0 }
 0x120   : > { %v923_v43 = vmax.f32 %v654_v10, 0.0 }
 0x124   : > { %v3197_v13 = vpop.f32.mrf.mxu2  ;;  %v705_v3 = vpop.f32.mrf.mxu3 }
 0x125   : > { %v706_v19 = vadd.f32 %v705_v3, %v2896_v22  ;;  %v3200_v62 = vpop.f32.mrf.mxu0  ;;  %v3202_v40 = vpop.f32.mrf.mxu1 }
 0x127   : > { %v1028_v51 = vmax.f32 %v706_v19, 0.0  ;;  %v967_v19 = vmax.f32 %v587_v1, 0.0 }
 0x128   : > { %2322 = vmatmul.msk.bf16.gmra.mxu0 %vm407_vm0, %v2809_v58  ;;  %1498 = vmatmul.bf16.gmra.mxu1 %v1086_v41  ;;  %v498_v41 = vadd.f32 %v3109_v12, %v2893_v21 }
 0x129   : > { %2306 = vmatmul.msk.bf16.gmra.mxu3 %vm407_vm0, %v2809_v58  ;;  %1587 = vmatmul.bf16.gmra.mxu2 %v1087_v48  ;;  %v3210_v42 = vpack.c.bf16 %v1028_v51, %v1023_v47  ;;  %v656_v58 = vadd.f32 %v2989_v35, %v2896_v22  ;;  %v1092_v10 = vpack.c.bf16 %v967_v19, %v962_v17 }
 0x12a   : > { %v966_v29 = vmax.f32 %v498_v41, 0.0  ;;  %v592_v17 = vadd.f32 %v3145_v56, %v3009_v50 }
 0x12b   : > { %3958 = vst [vmem:[#allocation9_spill] sm:$0xff] %v3210_v42  ;;  %v928_v3 = vmax.f32 %v656_v58, 0.0 }
 0x12c   : > { %v3212_v5 = vpop.f32.mrf.mxu2  ;;  %v708_v37 = vpop.f32.mrf.mxu3  ;;  %v1091_v18 = vpack.c.bf16 %v966_v29, %v961_v28  ;;  %v659_v28 = vadd.f32 %v3011_v55, %v2896_v22  ;;  %v503_v29 = vadd.f32 %v3143_v39, %v2893_v21  ;;  %v2564_v55 = vld [vmem:[%s3942_s3 + $0xd8] sm:$0xff] }
 0x12d   : > { %v3214_v38 = vpop.f32.mrf.mxu0  ;;  %v3216_v54 = vpop.f32.mrf.mxu1  ;;  %v709_v30 = vadd.f32 %v708_v37, %v2896_v22  ;;  %v3238_v6 = vpack.c.bf16 %v928_v3, %v923_v43  ;;  %v2556_v37 = vld [vmem:[%s3942_s3 + $0x98] sm:$0xff]  ;;  %v590_v3 = vadd.f32 %v3133_v20, %v3009_v50  ;;  %1736 = vmatpush.bf16.msra.mxu0 %v2564_v55 }
 0x12e   : > { %1647 = vmatpush.bf16.msra.mxu3 %v2556_v37  ;;  %v933_v19 = vmax.f32 %v659_v28, 0.0 }
 0x12f   : > { %v1033_v42 = vmax.f32 %v709_v30, 0.0 }
 0x134   : > { %v3231_v47 = vpop.f32.mrf.mxu2  ;;  %v710_v12 = vpop.f32.mrf.mxu3 }
 0x135   : > { %v711_v51 = vadd.f32 %v710_v12, %v2896_v22  ;;  %v3234_v35 = vpop.f32.mrf.mxu0  ;;  %v3236_v48 = vpop.f32.mrf.mxu1  ;;  %v976_v12 = vmax.f32 %v503_v29, 0.0 }
 0x137   : > { %v1038_v33 = vmax.f32 %v711_v51, 0.0  ;;  %v972_v51 = vmax.f32 %v590_v3, 0.0 }
 0x138   : > { %2323 = vmatmul.msk.bf16.gmra.mxu0 %vm407_vm0, %v2821_v61  ;;  %1503 = vmatmul.bf16.gmra.mxu1 %v1091_v18 }
 0x139   : > { %2307 = vmatmul.msk.bf16.gmra.mxu3 %vm407_vm0, %v2821_v61  ;;  %1592 = vmatmul.bf16.gmra.mxu2 %v1092_v10  ;;  %v3247_v41 = vpack.c.bf16 %v1038_v33, %v1033_v42  ;;  %v501_v61 = vadd.f32 %v3131_v7, %v2893_v21  ;;  %v661_v42 = vadd.f32 %v3026_v26, %v2896_v22  ;;  %v2572_v7 = vld [vmem:[%s3942_s3 + $0x118] sm:$0xff]  ;;  %v977_v26 = vmax.f32 %v592_v17, 0.0 }
 0x13a   : > { %1825 = vmatpush.bf16.msra.mxu1 %v2572_v7  ;;  %v508_v7 = vadd.f32 %v3174_v57, %v2893_v21 }
 0x13b   : > { %3959 = vst [vmem:[#allocation10_spill] sm:$0xff] %v3247_v41  ;;  %v971_v30 = vmax.f32 %v501_v61, 0.0  ;;  %v938_v39 = vmax.f32 %v661_v42, 0.0  ;;  %v1097_v41 = vpack.c.bf16 %v977_v26, %v972_v51  ;;  %v2584_v51 = vld [vmem:[%s3944_s5 + $0x38] sm:$0xff] }
 0x13c   : > { %v3249_v58 = vpop.f32.mrf.mxu2  ;;  %v713_v0 = vpop.f32.mrf.mxu3  ;;  %2026 = vmatpush.bf16.msra.mxu2 %v2584_v51 }
 0x13d   : > { %v3251_v1 = vpop.f32.mrf.mxu0  ;;  %v3253_v43 = vpop.f32.mrf.mxu1  ;;  %v714_v18 = vadd.f32 %v713_v0, %v2896_v22  ;;  %v1096_v28 = vpack.c.bf16 %v976_v12, %v971_v30  ;;  %v3281_v42 = vpack.c.bf16 %v938_v39, %v933_v19  ;;  %v664_v19 = vadd.f32 %v3042_v45, %v2896_v22 }
 0x13e   : > { %v506_v12 = vadd.f32 %v3159_v23, %v2893_v21  ;;  %v597_v39 = vadd.f32 %v3176_v46, %v3009_v50 }
 0x13f   : > { %v1043_v61 = vmax.f32 %v714_v18, 0.0  ;;  %v943_v45 = vmax.f32 %v664_v19, 0.0  ;;  %v986_v18 = vmax.f32 %v508_v7, 0.0  ;;  %v3320_v7 = vld [vmem:[%s3943_s4] ss:$0 sm:$0xff] }
 0x140   : > { %v981_v26 = vmax.f32 %v506_v12, 0.0  ;;  %v987_v57 = vmax.f32 %v597_v39, 0.0 }
 0x144   : > { %v3274_v20 = vpop.f32.mrf.mxu2  ;;  %v715_v33 = vpop.f32.mrf.mxu3 }
 0x145   : > { %v716_v56 = vadd.f32 %v715_v33, %v2896_v22  ;;  %v3277_v10 = vpop.f32.mrf.mxu0  ;;  %v3279_v37 = vpop.f32.mrf.mxu1 }
 0x147   : > { %v1048_v29 = vmax.f32 %v716_v56, 0.0 }
 0x148   : > { %2324 = vmatmul.msk.bf16.gmra.mxu0 %vm407_vm0, %v2842_v4  ;;  %1508 = vmatmul.bf16.gmra.mxu1 %v1096_v28 }
 0x149   : > { %2308 = vmatmul.msk.bf16.gmra.mxu3 %vm407_vm0, %v2842_v4  ;;  %1597 = vmatmul.bf16.gmra.mxu2 %v1097_v41  ;;  %v3287_v0 = vpack.c.bf16 %v1048_v29, %v1043_v61  ;;  %v666_v4 = vadd.f32 %v3063_v24, %v2896_v22  ;;  %v595_v41 = vadd.f32 %v3161_v53, %v3009_v50  ;;  %v3315_v29 = vperm.slane %v2883_v15, 4 }
 0x14b   : > { %3960 = vst [vmem:[#allocation11_spill] sm:$0xff] %v3287_v0  ;;  %v948_v23 = vmax.f32 %v666_v4, 0.0  ;;  %v982_v33 = vmax.f32 %v595_v41, 0.0  ;;  %v1101_v0 = vpack.c.bf16 %v986_v18, %v981_v26  ;;  %v2555_v41 = vld [vmem:[%s3942_s3 + $0x90] sm:$0xff] }
 0x14c   : > { %v3289_v3 = vpop.f32.mrf.mxu2  ;;  %v718_v17 = vpop.f32.mrf.mxu3  ;;  %1648 = vmatpush.bf16.msra.mxu3 %v2555_v41 }
 0x14d   : > { %v3291_v55 = vpop.f32.mrf.mxu0  ;;  %v3293_v30 = vpop.f32.mrf.mxu1  ;;  %v719_v56 = vadd.f32 %v718_v17, %v2896_v22  ;;  %v1102_v4 = vpack.c.bf16 %v987_v57, %v982_v33  ;;  %v3322_v17 = vpack.c.bf16 %v948_v23, %v943_v45 }
 0x14f   : > { %v1053_v19 = vmax.f32 %v719_v56, 0.0  ;;  %v511_v56 = vadd.f32 %v3200_v62, %v2893_v21  ;;  %v2563_v62 = vld [vmem:[%s3942_s3 + $0xd0] sm:$0xff] }
 0x150   : > { %1737 = vmatpush.bf16.msra.mxu0 %v2563_v62 }
 0x151   : > { %v991_v41 = vmax.f32 %v511_v56, 0.0 }
 0x154   : > { %v3311_v24 = vpop.f32.mrf.mxu2  ;;  %v720_v28 = vpop.f32.mrf.mxu3 }
 0x155   : > { %v721_v53 = vadd.f32 %v720_v28, %v2896_v22  ;;  %v821_v61 = vpop.f32.mrf.mxu0  ;;  %v1474_v46 = vpop.f32.mrf.mxu1  ;;  %v513_v28 = vadd.f32 %v3214_v38, %v2893_v21  ;;  %v2571_v38 = vld [vmem:[%s3942_s3 + $0x110] sm:$0xff] }
 0x156   : > { %v822_v51 = vadd.f32 %v821_v61, %v3315_v29  ;;  %v1475_v26 = vadd.f32 %v3320_v7, %v1474_v46  ;;  %v600_v46 = vadd.f32 %v3202_v40, %v3009_v50  ;;  %1826 = vmatpush.bf16.msra.mxu1 %v2571_v38 }
 0x157   : > { %v1058_v12 = vmax.f32 %v721_v53, 0.0 }
 0x158   : > { %2325 = vmatmul.msk.bf16.gmra.mxu0 %vm407_vm0, %v2860_v9  ;;  %1513 = vmatmul.bf16.gmra.mxu1 %v1101_v0  ;;  %v669_v0 = vadd.f32 %v3076_v25, %v2896_v22  ;;  %v905_v53 = vmax.f32 %v822_v51, 0.0  ;;  %v602_v25 = vadd.f32 %v3216_v54, %v3009_v50  ;;  %v996_v51 = vmax.f32 %v513_v28, 0.0 }
 0x159   : > { %2309 = vmatmul.msk.bf16.gmra.mxu3 %vm407_vm0, %v2860_v9  ;;  %1602 = vmatmul.bf16.gmra.mxu2 %v1102_v4  ;;  %v3331_v39 = vpack.c.bf16 %v1058_v12, %v1053_v19  ;;  %v671_v9 = vadd.f32 %v3091_v11, %v2896_v22  ;;  %v3351_v11 = vperm.slane %v2883_v15, 3  ;;  %v992_v54 = vmax.f32 %v600_v46, 0.0 }
 0x15a   : > { %v953_v12 = vmax.f32 %v669_v0, 0.0  ;;  %v997_v15 = vmax.f32 %v602_v25, 0.0  ;;  %v1106_v56 = vpack.c.bf16 %v996_v51, %v991_v41 }
 0x15b   : > { %3961 = vst [vmem:[#allocation12_spill] sm:$0xff] %v3331_v39  ;;  %v958_v4 = vmax.f32 %v671_v9, 0.0 }
 0x15c   : > { %v732_v45 = vpop.f32.mrf.mxu3  ;;  %v1563_v18 = vpop.f32.mrf.mxu2 }
 0x15d   : > { %v3339_v23 = vadd.f32 %v1563_v18, %v1475_v26  ;;  %v823_v33 = vpop.f32.mrf.mxu0  ;;  %v1476_v57 = vpop.f32.mrf.mxu1  ;;  %v733_v26 = vadd.f32 %v732_v45, %v3351_v11  ;;  %v3366_v62 = vpack.c.bf16 %v958_v4, %v953_v12  ;;  %v676_v12 = vadd.f32 %v3128_v31, %v2896_v22 }
 0x15e   : > { %v824_v61 = vadd.f32 %v823_v33, %v3315_v29  ;;  %v1477_v18 = vadd.f32 %v3320_v7, %v1476_v57 }
 0x15f   : > { %3962 = vst [vmem:[#allocation13_spill] sm:$0xff] %v3339_v23  ;;  %v904_v28 = vmax.f32 %v733_v26, 0.0 }
 0x160   : > { %v910_v19 = vmax.f32 %v824_v61, 0.0 }
 0x162   : > { %v3359_v40 = vpack.c.bf16 %v910_v19, %v905_v53  ;;  %v1107_v19 = vpack.c.bf16 %v997_v15, %v992_v54  ;;  %v518_v54 = vadd.f32 %v3251_v1, %v2893_v21 }
 0x164   : > { %v734_v33 = vpop.f32.mrf.mxu3  ;;  %v1565_v61 = vpop.f32.mrf.mxu2 }
 0x165   : > { %v735_v39 = vadd.f32 %v734_v33, %v3351_v11  ;;  %v3364_v23 = vadd.f32 %v1565_v61, %v1477_v18  ;;  %v826_v0 = vpop.f32.mrf.mxu0  ;;  %v1479_v9 = vpop.f32.mrf.mxu1  ;;  %v605_v18 = vadd.f32 %v3236_v48, %v3009_v50  ;;  %v2583_v33 = vld [vmem:[%s3944_s5 + $0x30] sm:$0xff] }
 0x166   : > { %v827_v57 = vadd.f32 %v826_v0, %v3315_v29  ;;  %v1480_v46 = vadd.f32 %v3320_v7, %v1479_v9  ;;  %v968_v0 = vmax.f32 %v676_v12, 0.0  ;;  %v1006_v9 = vmax.f32 %v518_v54, 0.0  ;;  %2027 = vmatpush.bf16.msra.mxu2 %v2583_v33 }
 0x167   : > { %v909_v53 = vmax.f32 %v735_v39, 0.0  ;;  %v674_v39 = vadd.f32 %v3107_v8, %v2896_v22  ;;  %v607_v8 = vadd.f32 %v3253_v43, %v3009_v50  ;;  %v679_v33 = vadd.f32 %v3141_v49, %v2896_v22 }
 0x168   : > { %2326 = vmatmul.msk.bf16.gmra.mxu0 %vm407_vm0, %v2905_v32  ;;  %1518 = vmatmul.bf16.gmra.mxu1 %v1106_v56  ;;  %v915_v15 = vmax.f32 %v827_v57, 0.0  ;;  %v1002_v56 = vmax.f32 %v605_v18, 0.0  ;;  %v612_v49 = vadd.f32 %v3293_v30, %v3009_v50 }
 0x169   : > { %v3370_v45 = vpack.c.bf16 %v909_v53, %v904_v28  ;;  %2310 = vmatmul.msk.bf16.gmra.mxu3 %vm407_vm0, %v2905_v32  ;;  %1607 = vmatmul.bf16.gmra.mxu2 %v1107_v19  ;;  %v516_v32 = vadd.f32 %v3234_v35, %v2893_v21  ;;  %v963_v61 = vmax.f32 %v674_v39, 0.0  ;;  %v1007_v28 = vmax.f32 %v607_v8, 0.0 }
 0x16b   : > { %v1001_v35 = vmax.f32 %v516_v32, 0.0  ;;  %v1112_v54 = vpack.c.bf16 %v1007_v28, %v1002_v56  ;;  %v523_v56 = vadd.f32 %v3291_v55, %v2893_v21 }
 0x16c   : > { %v737_v25 = vpop.f32.mrf.mxu3  ;;  %v1568_v38 = vpop.f32.mrf.mxu2 }
 0x16d   : > { %v3380_v4 = vadd.f32 %v1568_v38, %v1480_v46  ;;  %v828_v41 = vpop.f32.mrf.mxu0  ;;  %v1481_v51 = vpop.f32.mrf.mxu1  ;;  %v738_v53 = vadd.f32 %v737_v25, %v3351_v11  ;;  %v1111_v12 = vpack.c.bf16 %v1006_v9, %v1001_v35  ;;  %v2554_v25 = vld [vmem:[%s3942_s3 + $0x88] sm:$0xff]  ;;  %v521_v9 = vadd.f32 %v3277_v10, %v2893_v21 }
 0x16e   : > { %v829_v26 = vadd.f32 %v828_v41, %v3315_v29  ;;  %v1482_v48 = vadd.f32 %v3320_v7, %v1481_v51  ;;  %1649 = vmatpush.bf16.msra.mxu3 %v2554_v25  ;;  %v2570_v10 = vld [vmem:[%s3942_s3 + $0x108] sm:$0xff] }
 0x16f   : > { %v914_v41 = vmax.f32 %v738_v53, 0.0  ;;  %v1011_v55 = vmax.f32 %v521_v9, 0.0  ;;  %1827 = vmatpush.bf16.msra.mxu1 %v2570_v10  ;;  %v684_v10 = vadd.f32 %v3172_v16, %v2896_v22 }
 0x170   : > { %v920_v31 = vmax.f32 %v829_v26, 0.0 }
 0x172   : > { %v3394_v1 = vpack.c.bf16 %v920_v31, %v915_v15  ;;  %v3401_v15 = vpack.c.bf16 %v968_v0, %v963_v61 }
 0x174   : > { %v739_v19 = vpop.f32.mrf.mxu3  ;;  %v1570_v43 = vpop.f32.mrf.mxu2 }
 0x175   : > { %v740_v57 = vadd.f32 %v739_v19, %v3351_v11  ;;  %v3399_v46 = vadd.f32 %v1570_v43, %v1482_v48  ;;  %v831_v38 = vpop.f32.mrf.mxu0  ;;  %v1484_v39 = vpop.f32.mrf.mxu1  ;;  %v610_v48 = vadd.f32 %v3279_v37, %v3009_v50  ;;  %v2562_v19 = vld [vmem:[%s3942_s3 + $0xc8] sm:$0xff]  ;;  %v973_v43 = vmax.f32 %v679_v33, 0.0 }
 0x176   : > { %v832_v26 = vadd.f32 %v831_v38, %v3315_v29  ;;  %v1485_v18 = vadd.f32 %v3320_v7, %v1484_v39  ;;  %1738 = vmatpush.bf16.msra.mxu0 %v2562_v19  ;;  %v1017_v39 = vmax.f32 %v612_v49, 0.0 }
 0x177   : > { %v919_v32 = vmax.f32 %v740_v57, 0.0  ;;  %v1016_v57 = vmax.f32 %v523_v56, 0.0  ;;  %v1012_v37 = vmax.f32 %v610_v48, 0.0 }
 0x178   : > { %2327 = vmatmul.msk.bf16.gmra.mxu0 %vm407_vm0, %v2951_v2  ;;  %1523 = vmatmul.bf16.gmra.mxu1 %v1111_v12  ;;  %v925_v28 = vmax.f32 %v832_v26, 0.0 }
 0x179   : > { %2311 = vmatmul.msk.bf16.gmra.mxu3 %vm407_vm0, %v2951_v2  ;;  %1612 = vmatmul.bf16.gmra.mxu2 %v1112_v54  ;;  %v3410_v51 = vpack.c.bf16 %v919_v32, %v914_v41  ;;  %v681_v2 = vadd.f32 %v3156_v60, %v2896_v22 }
 0x17b   : > { %v978_v21 = vmax.f32 %v681_v2, 0.0  ;;  %v1117_v2 = vpack.c.bf16 %v1017_v39, %v1012_v37 }
 0x17c   : > { %v742_v8 = vpop.f32.mrf.mxu3  ;;  %v1573_v31 = vpop.f32.mrf.mxu2 }
 0x17d   : > { %v3418_v61 = vadd.f32 %v1573_v31, %v1485_v18  ;;  %v833_v0 = vpop.f32.mrf.mxu0  ;;  %v1486_v35 = vpop.f32.mrf.mxu1  ;;  %v743_v50 = vadd.f32 %v742_v8, %v3351_v11  ;;  %v1116_v18 = vpack.c.bf16 %v1016_v57, %v1011_v55  ;;  %v983_v57 = vmax.f32 %v684_v10, 0.0  ;;  %v2561_v10 = vld [vmem:[%s3942_s3 + $0xc0] sm:$0xff] }
 0x17e   : > { %v834_v53 = vadd.f32 %v833_v0, %v3315_v29  ;;  %v1487_v30 = vadd.f32 %v3320_v7, %v1486_v35  ;;  %v3442_v0 = vpack.c.bf16 %v978_v21, %v973_v43  ;;  %v2582_v21 = vld [vmem:[%s3944_s5 + $0x28] sm:$0xff]  ;;  %1739 = vmatpush.bf16.msra.mxu0 %v2561_v10 }
 0x17f   : > { %v924_v31 = vmax.f32 %v743_v50, 0.0  ;;  %2028 = vmatpush.bf16.msra.mxu2 %v2582_v21 }
 0x180   : > { %v930_v60 = vmax.f32 %v834_v53, 0.0 }
 0x182   : > { %v3435_v38 = vpack.c.bf16 %v930_v60, %v925_v28 }
 0x184   : > { %v744_v12 = vpop.f32.mrf.mxu3  ;;  %v1575_v41 = vpop.f32.mrf.mxu2 }
 0x185   : > { %v745_v32 = vadd.f32 %v744_v12, %v3351_v11  ;;  %v3440_v54 = vadd.f32 %v1575_v41, %v1487_v30  ;;  %v836_v25 = vpop.f32.mrf.mxu0  ;;  %v1489_v26 = vpop.f32.mrf.mxu1 }
 0x186   : > { %v837_v35 = vadd.f32 %v836_v25, %v3315_v29  ;;  %v1490_v9 = vadd.f32 %v3320_v7, %v1489_v26 }
 0x187   : > { %v929_v33 = vmax.f32 %v745_v32, 0.0 }
 0x188   : > { %2328 = vmatmul.msk.bf16.gmra.mxu0 %vm407_vm0, %v2991_v36  ;;  %1528 = vmatmul.bf16.gmra.mxu1 %v1116_v18  ;;  %v935_v60 = vmax.f32 %v837_v35, 0.0 }
 0x189   : > { %2312 = vmatmul.msk.bf16.gmra.mxu3 %vm407_vm0, %v2991_v36  ;;  %1617 = vmatmul.bf16.gmra.mxu2 %v1117_v2  ;;  %v3448_v8 = vpack.c.bf16 %v929_v33, %v924_v31  ;;  %v686_v36 = vadd.f32 %v3197_v13, %v2896_v22  ;;  %v2553_v31 = vld [vmem:[%s3942_s3 + $0x80] sm:$0xff] }
 0x18a   : > { %1650 = vmatpush.bf16.msra.mxu3 %v2553_v31 }
 0x18b   : > { %v988_v37 = vmax.f32 %v686_v36, 0.0  ;;  %v2569_v36 = vld [vmem:[%s3942_s3 + $0x100] sm:$0xff] }
 0x18c   : > { %v747_v56 = vpop.f32.mrf.mxu3  ;;  %v1578_v28 = vpop.f32.mrf.mxu2  ;;  %1828 = vmatpush.bf16.msra.mxu1 %v2569_v36 }
 0x18d   : > { %v3452_v53 = vadd.f32 %v1578_v28, %v1490_v9  ;;  %v838_v48 = vpop.f32.mrf.mxu0  ;;  %v1491_v49 = vpop.f32.mrf.mxu1  ;;  %v748_v39 = vadd.f32 %v747_v56, %v3351_v11  ;;  %v3469_v18 = vpack.c.bf16 %v988_v37, %v983_v57 }
 0x18e   : > { %v839_v19 = vadd.f32 %v838_v48, %v3315_v29  ;;  %v1492_v50 = vadd.f32 %v3320_v7, %v1491_v49  ;;  %v689_v49 = vadd.f32 %v3212_v5, %v2896_v22 }
 0x18f   : > { %v934_v25 = vmax.f32 %v748_v39, 0.0 }
 0x190   : > { %v940_v43 = vmax.f32 %v839_v19, 0.0  ;;  %v993_v21 = vmax.f32 %v689_v49, 0.0 }
 0x192   : > { %v3462_v55 = vpack.c.bf16 %v940_v43, %v935_v60  ;;  %v691_v60 = vadd.f32 %v3231_v47, %v2896_v22 }
 0x194   : > { %v749_v30 = vpop.f32.mrf.mxu3  ;;  %v1580_v12 = vpop.f32.mrf.mxu2  ;;  %v998_v57 = vmax.f32 %v691_v60, 0.0 }
 0x195   : > { %v750_v16 = vadd.f32 %v749_v30, %v3351_v11  ;;  %v3467_v41 = vadd.f32 %v1580_v12, %v1492_v50  ;;  %v841_v13 = vpop.f32.mrf.mxu0  ;;  %v1494_v32 = vpop.f32.mrf.mxu1 }
 0x196   : > { %v842_v2 = vadd.f32 %v841_v13, %v3315_v29  ;;  %v1495_v35 = vadd.f32 %v3320_v7, %v1494_v32  ;;  %v3505_v13 = vpack.c.bf16 %v998_v57, %v993_v21 }
 0x197   : > { %v939_v26 = vmax.f32 %v750_v16, 0.0 }
 0x198   : > { %2329 = vmatmul.msk.bf16.gmra.mxu0 %vm407_vm0, %v2719_v27  ;;  %1533 = vmatmul.bf16.gmra.mxu1 %v2932_v52 }
 0x199   : > { %2313 = vmatmul.msk.bf16.gmra.mxu3 %vm407_vm0, %v2719_v27  ;;  %1622 = vmatmul.bf16.gmra.mxu2 %v3074_v44  ;;  %v3480_v33 = vpack.c.bf16 %v939_v26, %v934_v25  ;;  %v945_v27 = vmax.f32 %v842_v2, 0.0 }
 0x19c   : > { %v752_v9 = vpop.f32.mrf.mxu3  ;;  %v1583_v56 = vpop.f32.mrf.mxu2 }
 0x19d   : > { %v3484_v28 = vadd.f32 %v1583_v56, %v1495_v35  ;;  %v843_v52 = vpop.f32.mrf.mxu0  ;;  %v3486_v48 = vpop.f32.mrf.mxu1  ;;  %v753_v5 = vadd.f32 %v752_v9, %v3351_v11 }
 0x19e   : > { %v844_v44 = vadd.f32 %v843_v52, %v3315_v29 }
 0x19f   : > { %v944_v12 = vmax.f32 %v753_v5, 0.0 }
 0x1a0   : > { %v950_v19 = vmax.f32 %v844_v44, 0.0  ;;  %v2581_v44 = vld [vmem:[%s3944_s5 + $0x20] sm:$0xff] }
 0x1a1   : > { %2029 = vmatpush.bf16.msra.mxu2 %v2581_v44  ;;  %v701_v44 = vadd.f32 %v3311_v24, %v2896_v22  ;;  %v3968_v24 = vld [vmem:[#allocation8_spill] sm:$0xff] }
 0x1a2   : > { %v3499_v43 = vpack.c.bf16 %v950_v19, %v945_v27 }
 0x1a4   : > { %v754_v37 = vpop.f32.mrf.mxu3  ;;  %v3502_v39 = vpop.f32.mrf.mxu2 }
 0x1a5   : > { %v755_v47 = vadd.f32 %v754_v37, %v3351_v11  ;;  %v846_v50 = vpop.f32.mrf.mxu0  ;;  %v1499_v30 = vpop.f32.mrf.mxu1 }
 0x1a6   : > { %v847_v25 = vadd.f32 %v846_v50, %v3315_v29  ;;  %v1500_v26 = vadd.f32 %v3320_v7, %v1499_v30  ;;  %v3963_v50 = vld [vmem:[#allocation2_spill] sm:$0xff]  ;;  %v3964_v30 = vld [vmem:[#allocation5_spill] sm:$0xff] }
 0x1a7   : > { %v949_v16 = vmax.f32 %v755_v47, 0.0 }
 0x1a8   : > { %2330 = vmatmul.msk.bf16.gmra.mxu0 %vm407_vm0, %v2738_v34  ;;  %1538 = vmatmul.bf16.gmra.mxu1 %v2972_v14  ;;  %v955_v52 = vmax.f32 %v847_v25, 0.0 }
 0x1a9   : > { %2314 = vmatmul.msk.bf16.gmra.mxu3 %vm407_vm0, %v2738_v34  ;;  %1627 = vmatmul.bf16.gmra.mxu2 %v3105_v63  ;;  %v3513_v32 = vpack.c.bf16 %v949_v16, %v944_v12  ;;  %v694_v34 = vadd.f32 %v3249_v58, %v2896_v22  ;;  %v696_v63 = vadd.f32 %v3274_v20, %v2896_v22  ;;  %v3965_v12 = vld [vmem:[#allocation7_spill] sm:$0xff] }
 0x1ab   : > { %v1003_v60 = vmax.f32 %v694_v34, 0.0  ;;  %v1008_v19 = vmax.f32 %v696_v63, 0.0 }
 0x1ac   : > { %v757_v31 = vpop.f32.mrf.mxu3  ;;  %v1588_v2 = vpop.f32.mrf.mxu2 }
 0x1ad   : > { %v3517_v35 = vadd.f32 %v1588_v2, %v1500_v26  ;;  %v848_v9 = vpop.f32.mrf.mxu0  ;;  %v3519_v56 = vpop.f32.mrf.mxu1  ;;  %v758_v10 = vadd.f32 %v757_v31, %v3351_v11  ;;  %v3535_v47 = vpack.c.bf16 %v1008_v19, %v1003_v60 }
 0x1ae   : > { %v849_v14 = vadd.f32 %v848_v9, %v3315_v29 }
 0x1af   : > { %v954_v20 = vmax.f32 %v758_v10, 0.0 }
 0x1b0   : > { %v960_v27 = vmax.f32 %v849_v14, 0.0 }
 0x1b2   : > { %v3529_v49 = vpack.c.bf16 %v960_v27, %v955_v52  ;;  %v699_v27 = vadd.f32 %v3289_v3, %v2896_v22  ;;  %v3967_v22 = vld [vmem:[#allocation6_spill] sm:$0xff] }
 0x1b4   : > { %v759_v36 = vpop.f32.mrf.mxu3  ;;  %v3532_v21 = vpop.f32.mrf.mxu2  ;;  %v1013_v10 = vmax.f32 %v699_v27, 0.0 }
 0x1b5   : > { %v760_v58 = vadd.f32 %v759_v36, %v3351_v11  ;;  %v851_v57 = vpop.f32.mrf.mxu0  ;;  %v1504_v5 = vpop.f32.mrf.mxu1  ;;  %v1018_v36 = vmax.f32 %v701_v44, 0.0 }
 0x1b6   : > { %v852_v25 = vadd.f32 %v851_v57, %v3315_v29  ;;  %v1505_v26 = vadd.f32 %v3320_v7, %v1504_v5 }
 0x1b7   : > { %v959_v37 = vmax.f32 %v760_v58, 0.0  ;;  %v3562_v3 = vpack.c.bf16 %v1018_v36, %v1013_v10 }
 0x1b8   : > { %2331 = vmatmul.msk.bf16.gmra.mxu0 %vm407_vm0, %v3963_v50  ;;  %1543 = vmatmul.bf16.gmra.mxu1 %v3964_v30  ;;  %v965_v34 = vmax.f32 %v852_v25, 0.0  ;;  %v3966_v25 = vld [vmem:[#allocation3_spill] sm:$0xff] }
 0x1b9   : > { %2315 = vmatmul.msk.bf16.gmra.mxu3 %vm407_vm0, %v3963_v50  ;;  %1632 = vmatmul.bf16.gmra.mxu2 %v3965_v12  ;;  %v3543_v16 = vpack.c.bf16 %v959_v37, %v954_v20 }
 0x1bc   : > { %v762_v31 = vpop.f32.mrf.mxu3  ;;  %v1593_v2 = vpop.f32.mrf.mxu2 }
 0x1bd   : > { %v3547_v9 = vadd.f32 %v1593_v2, %v1505_v26  ;;  %v853_v52 = vpop.f32.mrf.mxu0  ;;  %v3549_v14 = vpop.f32.mrf.mxu1  ;;  %v763_v58 = vadd.f32 %v762_v31, %v3351_v11 }
 0x1be   : > { %v854_v63 = vadd.f32 %v853_v52, %v3315_v29 }
 0x1bf   : > { %v964_v30 = vmax.f32 %v763_v58, 0.0  ;;  %v2580_v58 = vld [vmem:[%s3944_s5 + $0x18] sm:$0xff] }
 0x1c0   : > { %v970_v60 = vmax.f32 %v854_v63, 0.0  ;;  %2030 = vmatpush.bf16.msra.mxu2 %v2580_v58 }
 0x1c2   : > { %v3556_v19 = vpack.c.bf16 %v970_v60, %v965_v34 }
 0x1c4   : > { %v764_v57 = vpop.f32.mrf.mxu3  ;;  %v3559_v5 = vpop.f32.mrf.mxu2 }
 0x1c5   : > { %v765_v20 = vadd.f32 %v764_v57, %v3351_v11  ;;  %v856_v37 = vpop.f32.mrf.mxu0  ;;  %v1509_v50 = vpop.f32.mrf.mxu1 }
 0x1c6   : > { %v857_v31 = vadd.f32 %v856_v37, %v3315_v29  ;;  %v1510_v2 = vadd.f32 %v3320_v7, %v1509_v50 }
 0x1c7   : > { %v969_v12 = vmax.f32 %v765_v20, 0.0 }
 0x1c8   : > { %2332 = vmatmul.msk.bf16.gmra.mxu0 %vm407_vm0, %v3966_v25  ;;  %1548 = vmatmul.bf16.gmra.mxu1 %v3967_v22  ;;  %v975_v60 = vmax.f32 %v857_v31, 0.0  ;;  %v3969_v31 = vld [vmem:[#allocation4_spill] sm:$0xff] }
 0x1c9   : > { %2316 = vmatmul.msk.bf16.gmra.mxu3 %vm407_vm0, %v3966_v25  ;;  %1637 = vmatmul.bf16.gmra.mxu2 %v3968_v24  ;;  %v3570_v26 = vpack.c.bf16 %v969_v12, %v964_v30 }
 0x1cc   : > { %v767_v52 = vpop.f32.mrf.mxu3  ;;  %v1598_v34 = vpop.f32.mrf.mxu2 }
 0x1cd   : > { %v3574_v63 = vadd.f32 %v1598_v34, %v1510_v2  ;;  %v858_v27 = vpop.f32.mrf.mxu0  ;;  %v3576_v44 = vpop.f32.mrf.mxu1  ;;  %v768_v20 = vadd.f32 %v767_v52, %v3351_v11 }
 0x1ce   : > { %v859_v10 = vadd.f32 %v858_v27, %v3315_v29 }
 0x1cf   : > { %v974_v22 = vmax.f32 %v768_v20, 0.0 }
 0x1d0   : > { %v980_v36 = vmax.f32 %v859_v10, 0.0 }
 0x1d2   : > { %v3582_v57 = vpack.c.bf16 %v980_v36, %v975_v60 }
 0x1d4   : > { %v769_v37 = vpop.f32.mrf.mxu3  ;;  %v3585_v50 = vpop.f32.mrf.mxu2 }
 0x1d5   : > { %v770_v30 = vadd.f32 %v769_v37, %v3351_v11  ;;  %v861_v12 = vpop.f32.mrf.mxu0  ;;  %v1514_v25 = vpop.f32.mrf.mxu1 }
 0x1d6   : > { %v862_v34 = vadd.f32 %v861_v12, %v3315_v29  ;;  %v1515_v52 = vadd.f32 %v3320_v7, %v1514_v25 }
 0x1d7   : > { %v979_v24 = vmax.f32 %v770_v30, 0.0 }
 0x1d8   : > { %1740 = vmatmul.bf16.vlgmr.msra.gmra.mxu0 %v3370_v45  ;;  %1829 = vmatmul.bf16.vlgmr.msra.gmra.mxu1 %v3359_v40  ;;  %v985_v20 = vmax.f32 %v862_v34, 0.0 }
 0x1d9   : > { %1651 = vmatmul.bf16.vlgmr.msra.gmra.mxu3 %v3969_v31  ;;  %v3591_v2 = vpack.c.bf16 %v979_v24, %v974_v22 }
 0x1dc   : > { %v772_v27 = vpop.f32.mrf.mxu3  ;;  %v1603_v60 = vpop.f32.mrf.mxu2 }
 0x1dd   : > { %v3595_v10 = vadd.f32 %v1603_v60, %v1515_v52  ;;  %v863_v36 = vpop.f32.mrf.mxu0  ;;  %v3597_v58 = vpop.f32.mrf.mxu1  ;;  %v773_v30 = vadd.f32 %v772_v27, %v3351_v11 }
 0x1de   : > { %v864_v45 = vadd.f32 %v863_v36, %v3315_v29 }
 0x1df   : > { %v984_v52 = vmax.f32 %v773_v30, 0.0 }
 0x1e0   : > { %v990_v37 = vmax.f32 %v864_v45, 0.0 }
 0x1e2   : > { %v3600_v40 = vpack.c.bf16 %v990_v37, %v985_v20 }
 0x1e4   : > { %v774_v22 = vpop.f32.mrf.mxu3  ;;  %v3603_v24 = vpop.f32.mrf.mxu2 }
 0x1e5   : > { %3970 = vst [vmem:[#allocation2_spill] sm:$0xff] %v3603_v24  ;;  %v775_v12 = vadd.f32 %v774_v22, %v3351_v11  ;;  %v866_v25 = vpop.f32.mrf.mxu0  ;;  %v1519_v31 = vpop.f32.mrf.mxu1 }
 0x1e6   : > { %v867_v36 = vadd.f32 %v866_v25, %v3315_v29  ;;  %v1520_v27 = vadd.f32 %v3320_v7, %v1519_v31 }
 0x1e7   : > { %v989_v60 = vmax.f32 %v775_v12, 0.0 }
 0x1e8   : > { %1745 = vmatmul.bf16.gmra.mxu0 %v3410_v51  ;;  %1834 = vmatmul.bf16.gmra.mxu1 %v3394_v1  ;;  %v995_v30 = vmax.f32 %v867_v36, 0.0 }
 0x1e9   : > { %1656 = vmatmul.bf16.gmra.mxu3 %v3204_v59  ;;  %v3609_v34 = vpack.c.bf16 %v989_v60, %v984_v52  ;;  %v2579_v59 = vld [vmem:[%s3944_s5 + $0x10] sm:$0xff] }
 0x1ea   : > { %2031 = vmatpush.bf16.msra.mxu2 %v2579_v59 }
 0x1ec   : > { %v777_v20 = vpop.f32.mrf.mxu3  ;;  %v1608_v45 = vpop.f32.mrf.mxu2 }
 0x1ed   : > { %v3613_v37 = vadd.f32 %v1608_v45, %v1520_v27  ;;  %v868_v22 = vpop.f32.mrf.mxu0  ;;  %v3615_v24 = vpop.f32.mrf.mxu1  ;;  %v778_v25 = vadd.f32 %v777_v20, %v3351_v11 }
 0x1ee   : > { %3972 = vst [vmem:[#allocation7_spill] sm:$0xff] %v3615_v24  ;;  %v869_v51 = vadd.f32 %v868_v22, %v3315_v29 }
 0x1ef   : > { %3971 = vst [vmem:[#allocation5_spill] sm:$0xff] %v3613_v37  ;;  %v994_v36 = vmax.f32 %v778_v25, 0.0 }
 0x1f0   : > { %v1000_v12 = vmax.f32 %v869_v51, 0.0 }
 0x1f2   : > { %v3621_v1 = vpack.c.bf16 %v1000_v12, %v995_v30 }
 0x1f4   : > { %v779_v31 = vpop.f32.mrf.mxu3  ;;  %v3624_v52 = vpop.f32.mrf.mxu2 }
 0x1f5   : > { %3973 = vst [vmem:[#allocation3_spill] sm:$0xff] %v3624_v52  ;;  %v780_v60 = vadd.f32 %v779_v31, %v3351_v11  ;;  %v871_v27 = vpop.f32.mrf.mxu0  ;;  %v1524_v45 = vpop.f32.mrf.mxu1 }
 0x1f6   : > { %v872_v30 = vadd.f32 %v871_v27, %v3315_v29  ;;  %v1525_v20 = vadd.f32 %v3320_v7, %v1524_v45 }
 0x1f7   : > { %v999_v24 = vmax.f32 %v780_v60, 0.0 }
 0x1f8   : > { %1750 = vmatmul.bf16.gmra.mxu0 %v3448_v8  ;;  %1839 = vmatmul.bf16.gmra.mxu1 %v3435_v38  ;;  %v1005_v25 = vmax.f32 %v872_v30, 0.0 }
 0x1f9   : > { %1661 = vmatmul.bf16.gmra.mxu3 %v3238_v6  ;;  %v3630_v22 = vpack.c.bf16 %v999_v24, %v994_v36 }
 0x1fc   : > { %v782_v51 = vpop.f32.mrf.mxu3  ;;  %v1613_v12 = vpop.f32.mrf.mxu2 }
 0x1fd   : > { %v3634_v59 = vadd.f32 %v1613_v12, %v1525_v20  ;;  %v873_v31 = vpop.f32.mrf.mxu0  ;;  %v3636_v52 = vpop.f32.mrf.mxu1  ;;  %v783_v6 = vadd.f32 %v782_v51, %v3351_v11 }
 0x1fe   : > { %v874_v8 = vadd.f32 %v873_v31, %v3315_v29 }
 0x1ff   : > { %v1004_v20 = vmax.f32 %v783_v6, 0.0 }
 0x200   : > { %v1010_v60 = vmax.f32 %v874_v8, 0.0 }
 0x202   : > { %v3639_v38 = vpack.c.bf16 %v1010_v60, %v1005_v25 }
 0x204   : > { %v784_v24 = vpop.f32.mrf.mxu3  ;;  %v3642_v36 = vpop.f32.mrf.mxu2 }
 0x205   : > { %3974 = vst [vmem:[#allocation6_spill] sm:$0xff] %v3642_v36  ;;  %v785_v27 = vadd.f32 %v784_v24, %v3351_v11  ;;  %v876_v45 = vpop.f32.mrf.mxu0  ;;  %v1529_v37 = vpop.f32.mrf.mxu1 }
 0x206   : > { %v877_v31 = vadd.f32 %v876_v45, %v3315_v29  ;;  %v1530_v51 = vadd.f32 %v3320_v7, %v1529_v37 }
 0x207   : > { %v1009_v12 = vmax.f32 %v785_v27, 0.0 }
 0x208   : > { %1755 = vmatmul.bf16.gmra.mxu0 %v3480_v33  ;;  %1844 = vmatmul.bf16.gmra.mxu1 %v3462_v55  ;;  %v1015_v6 = vmax.f32 %v877_v31, 0.0 }
 0x209   : > { %1666 = vmatmul.bf16.gmra.mxu3 %v3281_v42  ;;  %v3648_v30 = vpack.c.bf16 %v1009_v12, %v1004_v20  ;;  %v2578_v42 = vld [vmem:[%s3944_s5 + $0x8] sm:$0xff] }
 0x20a   : > { %2032 = vmatpush.bf16.msra.mxu2 %v2578_v42 }
 0x20c   : > { %v787_v25 = vpop.f32.mrf.mxu3  ;;  %v1618_v8 = vpop.f32.mrf.mxu2 }
 0x20d   : > { %v3652_v60 = vadd.f32 %v1618_v8, %v1530_v51  ;;  %v878_v24 = vpop.f32.mrf.mxu0  ;;  %v3654_v36 = vpop.f32.mrf.mxu1  ;;  %v788_v37 = vadd.f32 %v787_v25, %v3351_v11 }
 0x20e   : > { %3976 = vst [vmem:[#allocation4_spill] sm:$0xff] %v3654_v36  ;;  %v879_v33 = vadd.f32 %v878_v24, %v3315_v29 }
 0x20f   : > { %3975 = vst [vmem:[#allocation8_spill] sm:$0xff] %v3652_v60  ;;  %v1014_v31 = vmax.f32 %v788_v37, 0.0 }
 0x210   : > { %v1020_v27 = vmax.f32 %v879_v33, 0.0 }
 0x212   : > { %v3660_v55 = vpack.c.bf16 %v1020_v27, %v1015_v6 }
 0x214   : > { %v789_v45 = vpop.f32.mrf.mxu3  ;;  %v3663_v20 = vpop.f32.mrf.mxu2 }
 0x215   : > { %3977 = vst [vmem:[#allocation14_spill] sm:$0xff] %v3663_v20  ;;  %v790_v12 = vadd.f32 %v789_v45, %v3351_v11  ;;  %v881_v51 = vpop.f32.mrf.mxu0  ;;  %v1534_v8 = vpop.f32.mrf.mxu1 }
 0x216   : > { %v882_v6 = vadd.f32 %v881_v51, %v3315_v29  ;;  %v1535_v25 = vadd.f32 %v3320_v7, %v1534_v8 }
 0x217   : > { %v1019_v36 = vmax.f32 %v790_v12, 0.0 }
 0x218   : > { %1760 = vmatmul.bf16.gmra.mxu0 %v3513_v32  ;;  %1849 = vmatmul.bf16.gmra.mxu1 %v3499_v43  ;;  %v1025_v37 = vmax.f32 %v882_v6, 0.0 }
 0x219   : > { %1671 = vmatmul.bf16.gmra.mxu3 %v3322_v17  ;;  %v3669_v24 = vpack.c.bf16 %v1019_v36, %v1014_v31 }
 0x21c   : > { %v792_v33 = vpop.f32.mrf.mxu3  ;;  %v1623_v27 = vpop.f32.mrf.mxu2 }
 0x21d   : > { %v3673_v42 = vadd.f32 %v1623_v27, %v1535_v25  ;;  %v883_v45 = vpop.f32.mrf.mxu0  ;;  %v3675_v20 = vpop.f32.mrf.mxu1  ;;  %v793_v17 = vadd.f32 %v792_v33, %v3351_v11 }
 0x21e   : > { %v884_v32 = vadd.f32 %v883_v45, %v3315_v29 }
 0x21f   : > { %v1024_v25 = vmax.f32 %v793_v17, 0.0 }
 0x220   : > { %v1030_v12 = vmax.f32 %v884_v32, 0.0 }
 0x222   : > { %v3678_v43 = vpack.c.bf16 %v1030_v12, %v1025_v37 }
 0x224   : > { %v794_v36 = vpop.f32.mrf.mxu3  ;;  %v3681_v31 = vpop.f32.mrf.mxu2 }
 0x225   : > { %3978 = vst [vmem:[#allocation15_spill] sm:$0xff] %v3681_v31  ;;  %v795_v51 = vadd.f32 %v794_v36, %v3351_v11  ;;  %v886_v8 = vpop.f32.mrf.mxu0  ;;  %v1539_v60 = vpop.f32.mrf.mxu1 }
 0x226   : > { %v887_v45 = vadd.f32 %v886_v8, %v3315_v29  ;;  %v1540_v33 = vadd.f32 %v3320_v7, %v1539_v60 }
 0x227   : > { %v1029_v27 = vmax.f32 %v795_v51, 0.0 }
 0x228   : > { %1765 = vmatmul.bf16.gmra.mxu0 %v3543_v16  ;;  %1854 = vmatmul.bf16.gmra.mxu1 %v3529_v49  ;;  %v1035_v17 = vmax.f32 %v887_v45, 0.0 }
 0x229   : > { %1676 = vmatmul.bf16.gmra.mxu3 %v3366_v62  ;;  %v3687_v6 = vpack.c.bf16 %v1029_v27, %v1024_v25  ;;  %v2577_v62 = vld [vmem:[%s3944_s5] sm:$0xff] }
 0x22a   : > { %2033 = vmatpush.bf16.msra.mxu2 %v2577_v62 }
 0x22c   : > { %v797_v37 = vpop.f32.mrf.mxu3  ;;  %v1628_v32 = vpop.f32.mrf.mxu2 }
 0x22d   : > { %v3691_v12 = vadd.f32 %v1628_v32, %v1540_v33  ;;  %v888_v36 = vpop.f32.mrf.mxu0  ;;  %v3693_v31 = vpop.f32.mrf.mxu1  ;;  %v798_v60 = vadd.f32 %v797_v37, %v3351_v11 }
 0x22e   : > { %3980 = vst [vmem:[#allocation17_spill] sm:$0xff] %v3693_v31  ;;  %v889_v16 = vadd.f32 %v888_v36, %v3315_v29 }
 0x22f   : > { %3979 = vst [vmem:[#allocation16_spill] sm:$0xff] %v3691_v12  ;;  %v1034_v45 = vmax.f32 %v798_v60, 0.0 }
 0x230   : > { %v1040_v51 = vmax.f32 %v889_v16, 0.0 }
 0x232   : > { %v3699_v49 = vpack.c.bf16 %v1040_v51, %v1035_v17 }
 0x234   : > { %v799_v8 = vpop.f32.mrf.mxu3  ;;  %v3702_v25 = vpop.f32.mrf.mxu2 }
 0x235   : > { %3981 = vst [vmem:[#allocation18_spill] sm:$0xff] %v3702_v25  ;;  %v800_v27 = vadd.f32 %v799_v8, %v3351_v11  ;;  %v891_v33 = vpop.f32.mrf.mxu0  ;;  %v1544_v32 = vpop.f32.mrf.mxu1 }
 0x236   : > { %v892_v17 = vadd.f32 %v891_v33, %v3315_v29  ;;  %v1545_v37 = vadd.f32 %v3320_v7, %v1544_v32 }
 0x237   : > { %v1039_v31 = vmax.f32 %v800_v27, 0.0 }
 0x238   : > { %1770 = vmatmul.bf16.gmra.mxu0 %v3570_v26  ;;  %1859 = vmatmul.bf16.gmra.mxu1 %v3556_v19  ;;  %v1045_v60 = vmax.f32 %v892_v17, 0.0 }
 0x239   : > { %1681 = vmatmul.bf16.gmra.mxu3 %v3401_v15  ;;  %v3708_v36 = vpack.c.bf16 %v1039_v31, %v1034_v45 }
 0x23c   : > { %v802_v16 = vpop.f32.mrf.mxu3  ;;  %v1633_v51 = vpop.f32.mrf.mxu2 }
 0x23d   : > { %v3712_v62 = vadd.f32 %v1633_v51, %v1545_v37  ;;  %v893_v8 = vpop.f32.mrf.mxu0  ;;  %v3714_v25 = vpop.f32.mrf.mxu1  ;;  %v803_v15 = vadd.f32 %v802_v16, %v3351_v11 }
 0x23e   : > { %3982 = vst [vmem:[#allocation19_spill] sm:$0xff] %v3714_v25  ;;  %v894_v26 = vadd.f32 %v893_v8, %v3315_v29 }
 0x23f   : > { %v1044_v37 = vmax.f32 %v803_v15, 0.0 }
 0x240   : > { %v1050_v27 = vmax.f32 %v894_v26, 0.0 }
 0x242   : > { %v3717_v19 = vpack.c.bf16 %v1050_v27, %v1045_v60 }
 0x244   : > { %v804_v31 = vpop.f32.mrf.mxu3  ;;  %v3720_v45 = vpop.f32.mrf.mxu2 }
 0x245   : > { %3983 = vst [vmem:[#allocation20_spill] sm:$0xff] %v3720_v45  ;;  %v805_v33 = vadd.f32 %v804_v31, %v3351_v11  ;;  %v896_v32 = vpop.f32.mrf.mxu0  ;;  %v1549_v12 = vpop.f32.mrf.mxu1 }
 0x246   : > { %v897_v8 = vadd.f32 %v896_v32, %v3315_v29  ;;  %v1550_v16 = vadd.f32 %v3320_v7, %v1549_v12 }
 0x247   : > { %v1049_v51 = vmax.f32 %v805_v33, 0.0 }
 0x248   : > { %1775 = vmatmul.bf16.gmra.mxu0 %v3591_v2  ;;  %1864 = vmatmul.bf16.gmra.mxu1 %v3582_v57  ;;  %v1055_v15 = vmax.f32 %v897_v8, 0.0 }
 0x249   : > { %1686 = vmatmul.bf16.gmra.mxu3 %v3442_v0  ;;  %v3726_v17 = vpack.c.bf16 %v1049_v51, %v1044_v37 }
 0x24c   : > { %v807_v60 = vpop.f32.mrf.mxu3  ;;  %v1638_v26 = vpop.f32.mrf.mxu2 }
 0x24d   : > { %v3730_v27 = vadd.f32 %v1638_v26, %v1550_v16  ;;  %v898_v31 = vpop.f32.mrf.mxu0  ;;  %v3732_v45 = vpop.f32.mrf.mxu1  ;;  %v808_v0 = vadd.f32 %v807_v60, %v3351_v11 }
 0x24e   : > { %v899_v2 = vadd.f32 %v898_v31, %v3315_v29  ;;  %v3984_v31 = vld [vmem:[#allocation13_spill] sm:$0xff] }
 0x24f   : > { %v1054_v12 = vmax.f32 %v808_v0, 0.0 }
 0x250   : > { %v1060_v33 = vmax.f32 %v899_v2, 0.0 }
 0x252   : > { %v3735_v57 = vpack.c.bf16 %v1060_v33, %v1055_v15 }
 0x254   : > { %v809_v37 = vpop.f32.mrf.mxu3 }
 0x255   : > { %v810_v32 = vadd.f32 %v809_v37, %v3351_v11  ;;  %v1741_v51 = vpop.f32.mrf.mxu0  ;;  %v1830_v7 = vpop.f32.mrf.mxu1 }
 0x257   : > { %v1059_v25 = vmax.f32 %v810_v32, 0.0 }
 0x258   : > { %1780 = vmatmul.bf16.gmra.mxu0 %v3609_v34  ;;  %1869 = vmatmul.bf16.gmra.mxu1 %v3600_v40 }
 0x259   : > { %1691 = vmatmul.bf16.gmra.mxu3 %v3469_v18  ;;  %v3742_v8 = vpack.c.bf16 %v1059_v25, %v1054_v12 }
 0x25c   : > { %v1652_v29 = vpop.f32.mrf.mxu3 }
 0x25d   : > { %v1743_v16 = vpop.f32.mrf.mxu0  ;;  %v1832_v26 = vpop.f32.mrf.mxu1  ;;  %v1653_v60 = vadd.f32 %v1652_v29, %v3984_v31 }
 0x25f   : > { %v1742_v15 = vadd.f32 %v1741_v51, %v1653_v60 }
 0x261   : > { %v1831_v37 = vadd.f32 %v1830_v7, %v1742_v15 }
 0x263   : > { %v1910_v40 = vmax.f32 %v1831_v37, 0.0 }
 0x264   : > { %v1654_v2 = vpop.f32.mrf.mxu3 }
 0x265   : > { %v1655_v11 = vadd.f32 %v1654_v2, %v3364_v23  ;;  %v1746_v33 = vpop.f32.mrf.mxu0  ;;  %v1835_v0 = vpop.f32.mrf.mxu1 }
 0x267   : > { %v1744_v32 = vadd.f32 %v1743_v16, %v1655_v11 }
 0x268   : > { %1785 = vmatmul.bf16.gmra.mxu0 %v3630_v22  ;;  %1874 = vmatmul.bf16.gmra.mxu1 %v3621_v1 }
 0x269   : > { %v1833_v18 = vadd.f32 %v1832_v26, %v1744_v32  ;;  %1696 = vmatmul.bf16.gmra.mxu3 %v3505_v13 }
 0x26b   : > { %v1911_v34 = vmax.f32 %v1833_v18, 0.0 }
 0x26c   : > { %v1657_v25 = vpop.f32.mrf.mxu3 }
 0x26d   : > { %v1942_v12 = vpack.c.bf16 %v1911_v34, %v1910_v40  ;;  %v1748_v29 = vpop.f32.mrf.mxu0  ;;  %v1837_v51 = vpop.f32.mrf.mxu1  ;;  %v1658_v31 = vadd.f32 %v1657_v25, %v3380_v4 }
 0x26f   : > { %2034 = vmatmul.bf16.vlgmr.msra.gmra.mxu2 %v1942_v12  ;;  %v1747_v23 = vadd.f32 %v1746_v33, %v1658_v31 }
 0x271   : > { %v1836_v15 = vadd.f32 %v1835_v0, %v1747_v23 }
 0x273   : > { %v1912_v26 = vmax.f32 %v1836_v15, 0.0  ;;  %v3985_v15 = vld [vmem:[#allocation9_spill] sm:$0xff] }
 0x274   : > { %v1659_v60 = vpop.f32.mrf.mxu3 }
 0x275   : > { %v1660_v7 = vadd.f32 %v1659_v60, %v3399_v46  ;;  %v1751_v16 = vpop.f32.mrf.mxu0  ;;  %v1840_v22 = vpop.f32.mrf.mxu1 }
 0x277   : > { %v1749_v1 = vadd.f32 %v1748_v29, %v1660_v7 }
 0x278   : > { %1790 = vmatmul.bf16.gmra.mxu0 %v3648_v30  ;;  %1879 = vmatmul.bf16.gmra.mxu1 %v3639_v38 }
 0x279   : > { %v1838_v13 = vadd.f32 %v1837_v51, %v1749_v1  ;;  %1701 = vmatmul.bf16.gmra.mxu3 %v3535_v47 }
 0x27b   : > { %v1913_v2 = vmax.f32 %v1838_v13, 0.0 }
 0x27c   : > { %v1662_v11 = vpop.f32.mrf.mxu3 }
 0x27d   : > { %v1753_v4 = vpop.f32.mrf.mxu0  ;;  %v1842_v37 = vpop.f32.mrf.mxu1  ;;  %v1943_v33 = vpack.c.bf16 %v1913_v2, %v1912_v26  ;;  %v1663_v32 = vadd.f32 %v1662_v11, %v3418_v61 }
 0x27f   : > { %2039 = vmatmul.bf16.gmra.mxu2 %v1943_v33  ;;  %v1752_v46 = vadd.f32 %v1751_v16, %v1663_v32 }
 0x281   : > { %v1841_v34 = vadd.f32 %v1840_v22, %v1752_v46 }
 0x283   : > { %v1914_v25 = vmax.f32 %v1841_v34, 0.0 }
 0x284   : > { %v1664_v18 = vpop.f32.mrf.mxu3 }
 0x285   : > { %v1665_v0 = vadd.f32 %v1664_v18, %v3440_v54  ;;  %v1756_v40 = vpop.f32.mrf.mxu0  ;;  %v1845_v30 = vpop.f32.mrf.mxu1 }
 0x287   : > { %v1754_v38 = vadd.f32 %v1753_v4, %v1665_v0 }
 0x288   : > { %1795 = vmatmul.bf16.gmra.mxu0 %v3669_v24  ;;  %1884 = vmatmul.bf16.gmra.mxu1 %v3660_v55 }
 0x289   : > { %v1843_v47 = vadd.f32 %v1842_v37, %v1754_v38  ;;  %1706 = vmatmul.bf16.gmra.mxu3 %v3562_v3 }
 0x28b   : > { %v1915_v12 = vmax.f32 %v1843_v47, 0.0 }
 0x28c   : > { %v1667_v29 = vpop.f32.mrf.mxu3 }
 0x28d   : > { %v1758_v61 = vpop.f32.mrf.mxu0  ;;  %v1847_v51 = vpop.f32.mrf.mxu1  ;;  %v1944_v31 = vpack.c.bf16 %v1915_v12, %v1914_v25  ;;  %v1668_v23 = vadd.f32 %v1667_v29, %v3452_v53 }
 0x28f   : > { %2044 = vmatmul.bf16.gmra.mxu2 %v1944_v31  ;;  %v1757_v54 = vadd.f32 %v1756_v40, %v1668_v23 }
 0x291   : > { %v1846_v22 = vadd.f32 %v1845_v30, %v1757_v54  ;;  %v3986_v30 = vld [vmem:[#allocation10_spill] sm:$0xff] }
 0x293   : > { %v1916_v1 = vmax.f32 %v1846_v22, 0.0 }
 0x294   : > { %v1669_v60 = vpop.f32.mrf.mxu3 }
 0x295   : > { %v1670_v7 = vadd.f32 %v1669_v60, %v3467_v41  ;;  %v1761_v16 = vpop.f32.mrf.mxu0  ;;  %v1850_v24 = vpop.f32.mrf.mxu1  ;;  %v3768_v41 = vld [vmem:[%s3943_s4] ss:$0 sm:$0xff] }
 0x296   : > { %v1502_v29 = vadd.f32 %v3768_v41, %v3519_v56 }
 0x297   : > { %v1759_v55 = vadd.f32 %v1758_v61, %v1670_v7 }
 0x298   : > { %1800 = vmatmul.bf16.gmra.mxu0 %v3687_v6  ;;  %1889 = vmatmul.bf16.gmra.mxu1 %v3678_v43  ;;  %v1497_v43 = vadd.f32 %v3768_v41, %v3486_v48  ;;  %v1591_v61 = vadd.f32 %v3532_v21, %v1502_v29 }
 0x299   : > { %v1848_v3 = vadd.f32 %v1847_v51, %v1759_v55  ;;  %1711 = vmatmul.bf16.gmra.mxu3 %v3985_v15  ;;  %v1507_v15 = vadd.f32 %v3768_v41, %v3549_v14 }
 0x29a   : > { %v1586_v6 = vadd.f32 %v3502_v39, %v1497_v43  ;;  %v3988_v43 = vld [vmem:[#allocation12_spill] sm:$0xff] }
 0x29b   : > { %v1917_v13 = vmax.f32 %v1848_v3, 0.0 }
 0x29c   : > { %v1672_v26 = vpop.f32.mrf.mxu3 }
 0x29d   : > { %v1763_v53 = vpop.f32.mrf.mxu0  ;;  %v1852_v2 = vpop.f32.mrf.mxu1  ;;  %v1945_v11 = vpack.c.bf16 %v1917_v13, %v1916_v1  ;;  %v1673_v4 = vadd.f32 %v1672_v26, %v3484_v28  ;;  %v1596_v1 = vadd.f32 %v3559_v5, %v1507_v15  ;;  %v3991_v15 = vld [vmem:[#allocation7_spill] sm:$0xff] }
 0x29f   : > { %2049 = vmatmul.bf16.gmra.mxu2 %v1945_v11  ;;  %v1762_v37 = vadd.f32 %v1761_v16, %v1673_v4  ;;  %v3987_v16 = vld [vmem:[#allocation11_spill] sm:$0xff] }
 0x2a1   : > { %v1851_v0 = vadd.f32 %v1850_v24, %v1762_v37 }
 0x2a3   : > { %v1918_v34 = vmax.f32 %v1851_v0, 0.0 }
 0x2a4   : > { %v1674_v33 = vpop.f32.mrf.mxu3 }
 0x2a5   : > { %v1675_v32 = vadd.f32 %v1674_v33, %v1586_v6  ;;  %v1766_v46 = vpop.f32.mrf.mxu0  ;;  %v1855_v18 = vpop.f32.mrf.mxu1 }
 0x2a7   : > { %v1764_v40 = vadd.f32 %v1763_v53, %v1675_v32 }
 0x2a8   : > { %1805 = vmatmul.bf16.gmra.mxu0 %v3708_v36  ;;  %1894 = vmatmul.bf16.gmra.mxu1 %v3699_v49 }
 0x2a9   : > { %v1853_v28 = vadd.f32 %v1852_v2, %v1764_v40  ;;  %1716 = vmatmul.bf16.gmra.mxu3 %v3986_v30 }
 0x2ab   : > { %v1919_v38 = vmax.f32 %v1853_v28, 0.0 }
 0x2ac   : > { %v1677_v47 = vpop.f32.mrf.mxu3 }
 0x2ad   : > { %v1768_v48 = vpop.f32.mrf.mxu0  ;;  %v1857_v25 = vpop.f32.mrf.mxu1  ;;  %v1946_v39 = vpack.c.bf16 %v1919_v38, %v1918_v34  ;;  %v1678_v12 = vadd.f32 %v1677_v47, %v3517_v35 }
 0x2af   : > { %2054 = vmatmul.bf16.gmra.mxu2 %v1946_v39  ;;  %v1767_v36 = vadd.f32 %v1766_v46, %v1678_v12  ;;  %v1512_v46 = vadd.f32 %v3768_v41, %v3576_v44  ;;  %v1517_v44 = vadd.f32 %v3768_v41, %v3597_v58  ;;  %v3990_v58 = vld [vmem:[#allocation5_spill] sm:$0xff] }
 0x2b1   : > { %v1856_v54 = vadd.f32 %v1855_v18, %v1767_v36  ;;  %v1601_v18 = vadd.f32 %v3585_v50, %v1512_v46  ;;  %v3989_v50 = vld [vmem:[#allocation2_spill] sm:$0xff] }
 0x2b3   : > { %v1920_v35 = vmax.f32 %v1856_v54, 0.0 }
 0x2b4   : > { %v1679_v51 = vpop.f32.mrf.mxu3 }
 0x2b5   : > { %v1680_v49 = vadd.f32 %v1679_v51, %v1591_v61  ;;  %v1771_v31 = vpop.f32.mrf.mxu0  ;;  %v1860_v23 = vpop.f32.mrf.mxu1  ;;  %v1606_v61 = vadd.f32 %v3989_v50, %v1517_v44 }
 0x2b7   : > { %v1769_v60 = vadd.f32 %v1768_v48, %v1680_v49 }
 0x2b8   : > { %1810 = vmatmul.bf16.gmra.mxu0 %v3726_v17  ;;  %1899 = vmatmul.bf16.gmra.mxu1 %v3717_v19 }
 0x2b9   : > { %v1858_v7 = vadd.f32 %v1857_v25, %v1769_v60  ;;  %1721 = vmatmul.bf16.gmra.mxu3 %v3987_v16  ;;  %v3798_v16 = vpop.f32.mrf.mxu2 }
 0x2bb   : > { %v1921_v24 = vmax.f32 %v1858_v7, 0.0 }
 0x2bc   : > { %v1682_v22 = vpop.f32.mrf.mxu3 }
 0x2bd   : > { %v1773_v56 = vpop.f32.mrf.mxu0  ;;  %v1862_v55 = vpop.f32.mrf.mxu1  ;;  %v1947_v21 = vpack.c.bf16 %v1921_v24, %v1920_v35  ;;  %v1683_v3 = vadd.f32 %v1682_v22, %v3547_v9 }
 0x2bf   : > { %2059 = vmatmul.bf16.gmra.mxu2 %v1947_v21  ;;  %v1772_v17 = vadd.f32 %v1771_v31, %v1683_v3  ;;  %v3804_v3 = vld [vmem:[%s3945_s6] ss:$0 sm:$0xff] }
 0x2c1   : > { %v1861_v2 = vadd.f32 %v1860_v23, %v1772_v17 }
 0x2c3   : > { %v1922_v9 = vmax.f32 %v1861_v2, 0.0 }
 0x2c4   : > { %v1684_v13 = vpop.f32.mrf.mxu3 }
 0x2c5   : > { %v1685_v19 = vadd.f32 %v1684_v13, %v1596_v1  ;;  %v1776_v26 = vpop.f32.mrf.mxu0  ;;  %v1865_v53 = vpop.f32.mrf.mxu1  ;;  %v1522_v1 = vadd.f32 %v3768_v41, %v3991_v15  ;;  %v3992_v13 = vld [vmem:[#allocation3_spill] sm:$0xff] }
 0x2c7   : > { %v1774_v11 = vadd.f32 %v1773_v56, %v1685_v19  ;;  %v1611_v19 = vadd.f32 %v3992_v13, %v1522_v1 }
 0x2c8   : > { %1815 = vmatmul.bf16.gmra.mxu0 %v3742_v8  ;;  %1904 = vmatmul.bf16.gmra.mxu1 %v3735_v57 }
 0x2c9   : > { %v1863_v4 = vadd.f32 %v1862_v55, %v1774_v11  ;;  %1726 = vmatmul.bf16.gmra.mxu3 %v3988_v43 }
 0x2cb   : > { %v1923_v6 = vmax.f32 %v1863_v4, 0.0 }
 0x2cc   : > { %v1687_v37 = vpop.f32.mrf.mxu3 }
 0x2cd   : > { %v1778_v14 = vpop.f32.mrf.mxu0  ;;  %v1867_v33 = vpop.f32.mrf.mxu1  ;;  %v1948_v5 = vpack.c.bf16 %v1923_v6, %v1922_v9  ;;  %v1688_v32 = vadd.f32 %v1687_v37, %v3574_v63 }
 0x2cf   : > { %2064 = vmatmul.bf16.gmra.mxu2 %v1948_v5  ;;  %v1777_v8 = vadd.f32 %v1776_v26, %v1688_v32 }
 0x2d1   : > { %v1866_v30 = vadd.f32 %v1865_v53, %v1777_v8 }
 0x2d3   : > { %v1924_v47 = vmax.f32 %v1866_v30, 0.0  ;;  %v3993_v30 = vld [vmem:[#allocation6_spill] sm:$0xff] }
 0x2d4   : > { %v1689_v0 = vpop.f32.mrf.mxu3 }
 0x2d5   : > { %v1690_v57 = vadd.f32 %v1689_v0, %v1601_v18  ;;  %v1781_v40 = vpop.f32.mrf.mxu0  ;;  %v1870_v28 = vpop.f32.mrf.mxu1 }
 0x2d7   : > { %v1779_v34 = vadd.f32 %v1778_v14, %v1690_v57 }
 0x2d9   : > { %v1868_v38 = vadd.f32 %v1867_v33, %v1779_v34 }
 0x2db   : > { %v1925_v48 = vmax.f32 %v1868_v38, 0.0 }
 0x2dc   : > { %v1692_v25 = vpop.f32.mrf.mxu3 }
 0x2dd   : > { %v1783_v39 = vpop.f32.mrf.mxu0  ;;  %v1872_v12 = vpop.f32.mrf.mxu1  ;;  %v1949_v63 = vpack.c.bf16 %v1925_v48, %v1924_v47  ;;  %v1693_v29 = vadd.f32 %v1692_v25, %v3595_v10 }
 0x2df   : > { %2069 = vmatmul.bf16.gmra.mxu2 %v1949_v63  ;;  %v1782_v36 = vadd.f32 %v1781_v40, %v1693_v29  ;;  %v1527_v40 = vadd.f32 %v3768_v41, %v3636_v52 }
 0x2e1   : > { %v1871_v54 = vadd.f32 %v1870_v28, %v1782_v36  ;;  %v1616_v34 = vadd.f32 %v3993_v30, %v1527_v40 }
 0x2e3   : > { %v1926_v35 = vmax.f32 %v1871_v54, 0.0 }
 0x2e4   : > { %v1694_v51 = vpop.f32.mrf.mxu3 }
 0x2e5   : > { %v1695_v49 = vadd.f32 %v1694_v51, %v1606_v61  ;;  %v1786_v31 = vpop.f32.mrf.mxu0  ;;  %v1875_v23 = vpop.f32.mrf.mxu1 }
 0x2e7   : > { %v1784_v60 = vadd.f32 %v1783_v39, %v1695_v49 }
 0x2e9   : > { %v1873_v7 = vadd.f32 %v1872_v12, %v1784_v60  ;;  %v3995_v60 = vld [vmem:[#allocation4_spill] sm:$0xff] }
 0x2eb   : > { %v1927_v24 = vmax.f32 %v1873_v7, 0.0  ;;  %v1532_v7 = vadd.f32 %v3768_v41, %v3995_v60 }
 0x2ec   : > { %v1697_v10 = vpop.f32.mrf.mxu3 }
 0x2ed   : > { %v1788_v22 = vpop.f32.mrf.mxu0  ;;  %v1877_v56 = vpop.f32.mrf.mxu1  ;;  %v1950_v55 = vpack.c.bf16 %v1927_v24, %v1926_v35  ;;  %v1698_v21 = vadd.f32 %v1697_v10, %v3990_v58  ;;  %v3996_v24 = vld [vmem:[#allocation14_spill] sm:$0xff] }
 0x2ee   : > { %v1621_v10 = vadd.f32 %v3996_v24, %v1532_v7 }
 0x2ef   : > { %2074 = vmatmul.bf16.gmra.mxu2 %v1950_v55  ;;  %v1787_v26 = vadd.f32 %v1786_v31, %v1698_v21 }
 0x2f1   : > { %v1876_v9 = vadd.f32 %v1875_v23, %v1787_v26  ;;  %v3994_v23 = vld [vmem:[#allocation8_spill] sm:$0xff] }
 0x2f2   : > { %v2035_v17 = vpop.f32.mrf.mxu2 }
 0x2f3   : > { %v2036_v53 = vadd.f32 %v3804_v3, %v2035_v17  ;;  %v1928_v33 = vmax.f32 %v1876_v9, 0.0 }
 0x2f4   : > { %v1699_v2 = vpop.f32.mrf.mxu3 }
 0x2f5   : > { %2116 = vst.msk [vmem:[%s3813_s13] sm:$0xff] %vm2115_vm1, %v2036_v53  ;;  %v1700_v11 = vadd.f32 %v1699_v2, %v1611_v19  ;;  %v1791_v4 = vpop.f32.mrf.mxu0  ;;  %v1880_v43 = vpop.f32.mrf.mxu1 }
 0x2f7   : > { %v1789_v6 = vadd.f32 %v1788_v22, %v1700_v11 }
 0x2f9   : > { %v1878_v37 = vadd.f32 %v1877_v56, %v1789_v6 }
 0x2fa   : > { %v2037_v14 = vpop.f32.mrf.mxu2 }
 0x2fb   : > { %v1929_v5 = vmax.f32 %v1878_v37, 0.0  ;;  %v2038_v32 = vadd.f32 %v3804_v3, %v2037_v14  ;;  %v1537_v37 = vadd.f32 %v3768_v41, %v3675_v20 }
 0x2fc   : > { %v1702_v46 = vpop.f32.mrf.mxu3 }
 0x2fd   : > { %2117 = vst.msk [vmem:[%s3813_s13 + $0x8] sm:$0xff] %vm2115_vm1, %v2038_v32  ;;  %v1793_v18 = vpop.f32.mrf.mxu0  ;;  %v1882_v8 = vpop.f32.mrf.mxu1  ;;  %v1951_v0 = vpack.c.bf16 %v1929_v5, %v1928_v33  ;;  %v1703_v57 = vadd.f32 %v1702_v46, %v3634_v59  ;;  %v3997_v33 = vld [vmem:[#allocation15_spill] sm:$0xff] }
 0x2fe   : > { %v1626_v5 = vadd.f32 %v3997_v33, %v1537_v37 }
 0x2ff   : > { %2079 = vmatmul.bf16.gmra.mxu2 %v1951_v0  ;;  %v1792_v38 = vadd.f32 %v1791_v4, %v1703_v57 }
 0x301   : > { %v1881_v63 = vadd.f32 %v1880_v43, %v1792_v38 }
 0x302   : > { %v2040_v28 = vpop.f32.mrf.mxu2 }
 0x303   : > { %v2041_v47 = vadd.f32 %v3804_v3, %v2040_v28  ;;  %v1930_v50 = vmax.f32 %v1881_v63, 0.0 }
 0x304   : > { %v1704_v48 = vpop.f32.mrf.mxu3 }
 0x305   : > { %2118 = vst.msk [vmem:[%s3813_s13 + $0x10] sm:$0xff] %vm2115_vm1, %v2041_v47  ;;  %v1705_v25 = vadd.f32 %v1704_v48, %v1616_v34  ;;  %v1796_v39 = vpop.f32.mrf.mxu0  ;;  %v1885_v12 = vpop.f32.mrf.mxu1 }
 0x307   : > { %v1794_v29 = vadd.f32 %v1793_v18, %v1705_v25 }
 0x309   : > { %v1883_v59 = vadd.f32 %v1882_v8, %v1794_v29  ;;  %v3999_v29 = vld [vmem:[#allocation17_spill] sm:$0xff] }
 0x30a   : > { %v2042_v44 = vpop.f32.mrf.mxu2 }
 0x30b   : > { %v1931_v52 = vmax.f32 %v1883_v59, 0.0  ;;  %v2043_v61 = vadd.f32 %v3804_v3, %v2042_v44  ;;  %v1542_v59 = vadd.f32 %v3768_v41, %v3999_v29 }
 0x30c   : > { %v1707_v36 = vpop.f32.mrf.mxu3 }
 0x30d   : > { %2119 = vst.msk [vmem:[%s3813_s13 + $0x18] sm:$0xff] %vm2115_vm1, %v2043_v61  ;;  %v1798_v51 = vpop.f32.mrf.mxu0  ;;  %v1887_v49 = vpop.f32.mrf.mxu1  ;;  %v1952_v31 = vpack.c.bf16 %v1931_v52, %v1930_v50  ;;  %v1708_v54 = vadd.f32 %v1707_v36, %v3994_v23  ;;  %v4000_v50 = vld [vmem:[#allocation18_spill] sm:$0xff] }
 0x30e   : > { %v1631_v52 = vadd.f32 %v4000_v50, %v1542_v59 }
 0x30f   : > { %2084 = vmatmul.bf16.gmra.mxu2 %v1952_v31  ;;  %v1797_v22 = vadd.f32 %v1796_v39, %v1708_v54  ;;  %v3998_v39 = vld [vmem:[#allocation16_spill] sm:$0xff] }
 0x311   : > { %v1886_v1 = vadd.f32 %v1885_v12, %v1797_v22 }
 0x312   : > { %v2045_v35 = vpop.f32.mrf.mxu2 }
 0x313   : > { %v2046_v56 = vadd.f32 %v3804_v3, %v2045_v35  ;;  %v1932_v26 = vmax.f32 %v1886_v1, 0.0 }
 0x314   : > { %v1709_v55 = vpop.f32.mrf.mxu3 }
 0x315   : > { %2120 = vst.msk [vmem:[%s3813_s13 + $0x20] sm:$0xff] %vm2115_vm1, %v2046_v56  ;;  %v1710_v58 = vadd.f32 %v1709_v55, %v1621_v10  ;;  %v1801_v21 = vpop.f32.mrf.mxu0  ;;  %v1890_v15 = vpop.f32.mrf.mxu1 }
 0x317   : > { %v1799_v17 = vadd.f32 %v1798_v51, %v1710_v58 }
 0x319   : > { %v1888_v13 = vadd.f32 %v1887_v49, %v1799_v17 }
 0x31a   : > { %v2047_v19 = vpop.f32.mrf.mxu2 }
 0x31b   : > { %v1933_v53 = vmax.f32 %v1888_v13, 0.0  ;;  %v2048_v2 = vadd.f32 %v3804_v3, %v2047_v19  ;;  %v4002_v13 = vld [vmem:[#allocation20_spill] sm:$0xff] }
 0x31c   : > { %v1712_v11 = vpop.f32.mrf.mxu3 }
 0x31d   : > { %2121 = vst.msk [vmem:[%s3813_s13 + $0x28] sm:$0xff] %vm2115_vm1, %v2048_v2  ;;  %v1803_v4 = vpop.f32.mrf.mxu0  ;;  %v1892_v43 = vpop.f32.mrf.mxu1  ;;  %v1953_v9 = vpack.c.bf16 %v1933_v53, %v1932_v26  ;;  %v1713_v6 = vadd.f32 %v1712_v11, %v3673_v42 }
 0x31f   : > { %2089 = vmatmul.bf16.gmra.mxu2 %v1953_v9  ;;  %v1802_v32 = vadd.f32 %v1801_v21, %v1713_v6  ;;  %v4001_v21 = vld [vmem:[#allocation19_spill] sm:$0xff] }
 0x321   : > { %v1891_v40 = vadd.f32 %v1890_v15, %v1802_v32  ;;  %v1547_v15 = vadd.f32 %v3768_v41, %v4001_v21 }
 0x322   : > { %v2050_v14 = vpop.f32.mrf.mxu2 }
 0x323   : > { %v2051_v46 = vadd.f32 %v3804_v3, %v2050_v14  ;;  %v1934_v34 = vmax.f32 %v1891_v40, 0.0  ;;  %v1636_v19 = vadd.f32 %v4002_v13, %v1547_v15 }
 0x324   : > { %v1714_v18 = vpop.f32.mrf.mxu3 }
 0x325   : > { %2122 = vst.msk [vmem:[%s3813_s13 + $0x30] sm:$0xff] %vm2115_vm1, %v2051_v46  ;;  %v1715_v8 = vadd.f32 %v1714_v18, %v1626_v5  ;;  %v1806_v0 = vpop.f32.mrf.mxu0  ;;  %v1895_v57 = vpop.f32.mrf.mxu1 }
 0x327   : > { %v1804_v28 = vadd.f32 %v1803_v4, %v1715_v8 }
 0x329   : > { %v1893_v42 = vadd.f32 %v1892_v43, %v1804_v28 }
 0x32a   : > { %v2052_v30 = vpop.f32.mrf.mxu2 }
 0x32b   : > { %v1935_v20 = vmax.f32 %v1893_v42, 0.0  ;;  %v2053_v38 = vadd.f32 %v3804_v3, %v2052_v30 }
 0x32c   : > { %v1717_v47 = vpop.f32.mrf.mxu3 }
 0x32d   : > { %2123 = vst.msk [vmem:[%s3813_s13 + $0x38] sm:$0xff] %vm2115_vm1, %v2053_v38  ;;  %v1954_v48 = vpack.c.bf16 %v1935_v20, %v1934_v34  ;;  %v1808_v25 = vpop.f32.mrf.mxu0  ;;  %v1718_v12 = vadd.f32 %v1717_v47, %v3998_v39  ;;  %v1897_v63 = vpop.f32.mrf.mxu1 }
 0x32f   : > { %2094 = vmatmul.bf16.gmra.mxu2 %v1954_v48  ;;  %v1807_v61 = vadd.f32 %v1806_v0, %v1718_v12  ;;  %v1552_v0 = vadd.f32 %v3768_v41, %v3732_v45 }
 0x331   : > { %v1896_v31 = vadd.f32 %v1895_v57, %v1807_v61  ;;  %v1641_v40 = vadd.f32 %v3798_v16, %v1552_v0 }
 0x332   : > { %v2055_v44 = vpop.f32.mrf.mxu2 }
 0x333   : > { %v2056_v36 = vadd.f32 %v3804_v3, %v2055_v44  ;;  %v1936_v24 = vmax.f32 %v1896_v31, 0.0 }
 0x334   : > { %v1719_v51 = vpop.f32.mrf.mxu3 }
 0x335   : > { %2124 = vst.msk [vmem:[%s3813_s13 + $0x40] sm:$0xff] %vm2115_vm1, %v2056_v36  ;;  %v1720_v49 = vadd.f32 %v1719_v51, %v1631_v52  ;;  %v1811_v54 = vpop.f32.mrf.mxu0  ;;  %v1900_v7 = vpop.f32.mrf.mxu1 }
 0x337   : > { %v1809_v23 = vadd.f32 %v1808_v25, %v1720_v49 }
 0x339   : > { %v1898_v60 = vadd.f32 %v1897_v63, %v1809_v23 }
 0x33a   : > { %v2057_v35 = vpop.f32.mrf.mxu2 }
 0x33b   : > { %v1937_v10 = vmax.f32 %v1898_v60, 0.0  ;;  %v2058_v22 = vadd.f32 %v3804_v3, %v2057_v35 }
 0x33c   : > { %v1722_v56 = vpop.f32.mrf.mxu3 }
 0x33d   : > { %2125 = vst.msk [vmem:[%s3813_s13 + $0x48] sm:$0xff] %vm2115_vm1, %v2058_v22  ;;  %v1955_v55 = vpack.c.bf16 %v1937_v10, %v1936_v24  ;;  %v1723_v58 = vadd.f32 %v1722_v56, %v3712_v62  ;;  %v1813_v1 = vpop.f32.mrf.mxu0  ;;  %v1902_v2 = vpop.f32.mrf.mxu1 }
 0x33f   : > { %2099 = vmatmul.bf16.gmra.mxu2 %v1955_v55  ;;  %v1812_v26 = vadd.f32 %v1811_v54, %v1723_v58 }
 0x341   : > { %v1901_v43 = vadd.f32 %v1900_v7, %v1812_v26 }
 0x342   : > { %v2060_v17 = vpop.f32.mrf.mxu2 }
 0x343   : > { %v2061_v53 = vadd.f32 %v3804_v3, %v2060_v17  ;;  %v1938_v37 = vmax.f32 %v1901_v43, 0.0 }
 0x344   : > { %v1724_v11 = vpop.f32.mrf.mxu3 }
 0x345   : > { %2126 = vst.msk [vmem:[%s3813_s13 + $0x50] sm:$0xff] %vm2115_vm1, %v2061_v53  ;;  %v1725_v4 = vadd.f32 %v1724_v11, %v1636_v19  ;;  %v1816_v5 = vpop.f32.mrf.mxu0  ;;  %v1905_v18 = vpop.f32.mrf.mxu1 }
 0x347   : > { %v1814_v9 = vadd.f32 %v1813_v1, %v1725_v4 }
 0x349   : > { %v1903_v62 = vadd.f32 %v1902_v2, %v1814_v9 }
 0x34a   : > { %v2062_v6 = vpop.f32.mrf.mxu2 }
 0x34b   : > { %v1939_v14 = vmax.f32 %v1903_v62, 0.0  ;;  %v2063_v33 = vadd.f32 %v3804_v3, %v2062_v6 }
 0x34c   : > { %v1727_v32 = vpop.f32.mrf.mxu3 }
 0x34d   : > { %2127 = vst.msk [vmem:[%s3813_s13 + $0x58] sm:$0xff] %vm2115_vm1, %v2063_v33  ;;  %v1956_v46 = vpack.c.bf16 %v1939_v14, %v1938_v37  ;;  %v1728_v8 = vadd.f32 %v1727_v32, %v3730_v27  ;;  %v1818_v20 = vpop.f32.mrf.mxu0  ;;  %v1907_v47 = vpop.f32.mrf.mxu1 }
 0x34f   : > { %2104 = vmatmul.bf16.gmra.mxu2 %v1956_v46  ;;  %v1817_v28 = vadd.f32 %v1816_v5, %v1728_v8 }
 0x351   : > { %v1906_v38 = vadd.f32 %v1905_v18, %v1817_v28 }
 0x352   : > { %v2065_v57 = vpop.f32.mrf.mxu2 }
 0x353   : > { %v2066_v42 = vadd.f32 %v3804_v3, %v2065_v57  ;;  %v1940_v41 = vmax.f32 %v1906_v38, 0.0 }
 0x354   : > { %v1729_v30 = vpop.f32.mrf.mxu3 }
 0x355   : > { %2128 = vst.msk [vmem:[%s3813_s13 + $0x60] sm:$0xff] %vm2115_vm1, %v2066_v42  ;;  %v1730_v34 = vadd.f32 %v1729_v30, %v1641_v40 }
 0x357   : > { %v1819_v27 = vadd.f32 %v1818_v20, %v1730_v34 }
 0x359   : > { %v1908_v48 = vadd.f32 %v1907_v47, %v1819_v27 }
 0x35a   : > { %v2067_v45 = vpop.f32.mrf.mxu2 }
 0x35b   : > { %v1941_v25 = vmax.f32 %v1908_v48, 0.0  ;;  %v2068_v16 = vadd.f32 %v3804_v3, %v2067_v45 }
 0x35d   : > { %2129 = vst.msk [vmem:[%s3813_s13 + $0x68] sm:$0xff] %vm2115_vm1, %v2068_v16  ;;  %v1957_v39 = vpack.c.bf16 %v1941_v25, %v1940_v41 }
 0x35f   : > { %2109 = vmatmul.bf16.gmra.mxu2 %v1957_v39 }
 0x362   : > { %v2070_v12 = vpop.f32.mrf.mxu2 }
 0x363   : > { %v2071_v63 = vadd.f32 %v3804_v3, %v2070_v12 }
 0x365   : > { %2130 = vst.msk [vmem:[%s3813_s13 + $0x70] sm:$0xff] %vm2115_vm1, %v2071_v63 }
 0x36a   : > { %v2072_v29 = vpop.f32.mrf.mxu2 }
 0x36b   : > { %v2073_v59 = vadd.f32 %v3804_v3, %v2072_v29 }
 0x36d   : > { %2131 = vst.msk [vmem:[%s3813_s13 + $0x78] sm:$0xff] %vm2115_vm1, %v2073_v59 }
 0x372   : > { %v2075_v44 = vpop.f32.mrf.mxu2 }
 0x373   : > { %v2076_v50 = vadd.f32 %v3804_v3, %v2075_v44 }
 0x375   : > { %2132 = vst.msk [vmem:[%s3813_s13 + $0x80] sm:$0xff] %vm2115_vm1, %v2076_v50 }
 0x37a   : > { %v2077_v52 = vpop.f32.mrf.mxu2 }
 0x37b   : > { %v2078_v61 = vadd.f32 %v3804_v3, %v2077_v52 }
 0x37d   : > { %2133 = vst.msk [vmem:[%s3813_s13 + $0x88] sm:$0xff] %vm2115_vm1, %v2078_v61 }
 0x382   : > { %v2080_v36 = vpop.f32.mrf.mxu2 }
 0x383   : > { %v2081_v51 = vadd.f32 %v3804_v3, %v2080_v36 }
 0x385   : > { %2134 = vst.msk [vmem:[%s3813_s13 + $0x90] sm:$0xff] %vm2115_vm1, %v2081_v51 }
 0x38a   : > { %v2082_v49 = vpop.f32.mrf.mxu2 }
 0x38b   : > { %v2083_v31 = vadd.f32 %v3804_v3, %v2082_v49 }
 0x38d   : > { %2135 = vst.msk [vmem:[%s3813_s13 + $0x98] sm:$0xff] %vm2115_vm1, %v2083_v31 }
 0x392   : > { %v2085_v23 = vpop.f32.mrf.mxu2 }
 0x393   : > { %v2086_v54 = vadd.f32 %v3804_v3, %v2085_v23 }
 0x395   : > { %2136 = vst.msk [vmem:[%s3813_s13 + $0xa0] sm:$0xff] %vm2115_vm1, %v2086_v54 }
 0x39a   : > { %v2087_v60 = vpop.f32.mrf.mxu2 }
 0x39b   : > { %v2088_v7 = vadd.f32 %v3804_v3, %v2087_v60 }
 0x39d   : > { %2137 = vst.msk [vmem:[%s3813_s13 + $0xa8] sm:$0xff] %vm2115_vm1, %v2088_v7 }
 0x3a2   : > { %v2090_v35 = vpop.f32.mrf.mxu2 }
 0x3a3   : > { %v2091_v24 = vadd.f32 %v3804_v3, %v2090_v35 }
 0x3a5   : > { %2138 = vst.msk [vmem:[%s3813_s13 + $0xb0] sm:$0xff] %vm2115_vm1, %v2091_v24 }
 0x3aa   : > { %v2092_v10 = vpop.f32.mrf.mxu2 }
 0x3ab   : > { %v2093_v22 = vadd.f32 %v3804_v3, %v2092_v10 }
 0x3ad   : > { %2139 = vst.msk [vmem:[%s3813_s13 + $0xb8] sm:$0xff] %vm2115_vm1, %v2093_v22 }
 0x3b2   : > { %v2095_v56 = vpop.f32.mrf.mxu2 }
 0x3b3   : > { %v2096_v55 = vadd.f32 %v3804_v3, %v2095_v56 }
 0x3b5   : > { %2140 = vst.msk [vmem:[%s3813_s13 + $0xc0] sm:$0xff] %vm2115_vm1, %v2096_v55 }
 0x3ba   : > { %v2097_v58 = vpop.f32.mrf.mxu2 }
 0x3bb   : > { %v2098_v21 = vadd.f32 %v3804_v3, %v2097_v58 }
 0x3bd   : > { %2141 = vst.msk [vmem:[%s3813_s13 + $0xc8] sm:$0xff] %vm2115_vm1, %v2098_v21 }
 0x3c2   : > { %v2100_v15 = vpop.f32.mrf.mxu2 }
 0x3c3   : > { %v2101_v1 = vadd.f32 %v3804_v3, %v2100_v15 }
 0x3c5   : > { %2142 = vst.msk [vmem:[%s3813_s13 + $0xd0] sm:$0xff] %vm2115_vm1, %v2101_v1 }
 0x3ca   : > { %v2102_v17 = vpop.f32.mrf.mxu2 }
 0x3cb   : > { %v2103_v13 = vadd.f32 %v3804_v3, %v2102_v17 }
 0x3cd   : > { %2143 = vst.msk [vmem:[%s3813_s13 + $0xd8] sm:$0xff] %vm2115_vm1, %v2103_v13 }
 0x3d2   : > { %v2105_v19 = vpop.f32.mrf.mxu2 }
 0x3d3   : > { %v2106_v26 = vadd.f32 %v3804_v3, %v2105_v19 }
 0x3d5   : > { %2144 = vst.msk [vmem:[%s3813_s13 + $0xe0] sm:$0xff] %vm2115_vm1, %v2106_v26 }
 0x3da   : > { %v2107_v53 = vpop.f32.mrf.mxu2 }
 0x3db   : > { %v2108_v2 = vadd.f32 %v3804_v3, %v2107_v53 }
 0x3dd   : > { %2145 = vst.msk [vmem:[%s3813_s13 + $0xe8] sm:$0xff] %vm2115_vm1, %v2108_v2 }
 0x3e2   : > { %v2110_v11 = vpop.f32.mrf.mxu2 }
 0x3e3   : > { %v2111_v4 = vadd.f32 %v3804_v3, %v2110_v11 }
 0x3e5   : > { %2146 = vst.msk [vmem:[%s3813_s13 + $0xf0] sm:$0xff] %vm2115_vm1, %v2111_v4 }
 0x3ea   : > { %v2112_v43 = vpop.f32.mrf.mxu2 }
 0x3eb   : > { %v2113_v9 = vadd.f32 %v3804_v3, %v2112_v43 }
 0x3ed   : > { %2147 = vst.msk [vmem:[%s3813_s13 + $0xf8] sm:$0xff] %vm2115_vm1, %v2113_v9 }
 0x3ee PF: > { %s17_s24 = sadd.s32 1, %s2608_s24  }
 0x3ef   : > { %p14_p4 = scmp.ge.s32.totalorder %s17_s24, 4  }
 0x3f1   :  { %16 = sbr.rel (!%p14_p4) target bundleno = 1 (0x1), region = 78 }

</bundles_post_ra>
